<compile_context>
chip_gen: v5e
topology: v5e:2x2
jax: 0.10.0
libtpu: 0.0.40
codegen_flags: <defaults>
</compile_context>

<pallas_src>
import jax
import jax.numpy as jnp
from jax.experimental import pallas as pl
from jax.experimental.pallas import tpu as pltpu


def _gelu_tanh(x):
    # PyTorch gelu(approximate='tanh'):
    # 0.5 * x * (1 + tanh(sqrt(2/pi) * (x + 0.044715 * x^3)))
    c = 0.7978845608028654  # sqrt(2/pi)
    return 0.5 * x * (1.0 + jnp.tanh(c * (x + 0.044715 * x * x * x)))


def _make_mlp_kernel(ti, split):
    """Kernel factory: `split` statically unrolled half-slabs of width ti/split."""
    th = ti // split

    def mlp_kernel(x_ref, wfc_ref, bfc_ref, wproj_ref, bproj_ref, o_ref, acc_ref):
        j = pl.program_id(1)

        # Fold the c_proj bias into the accumulator init so the epilogue is
        # just a cast + store.
        @pl.when(j == 0)
        def _():
            acc_ref[...] = jnp.broadcast_to(
                bproj_ref[...].astype(jnp.float32), acc_ref.shape)

        x = x_ref[...]
        # Statically unrolled half-slab split: the gelu (VPU/EUP) of half s can
        # overlap the MXU matmuls of the neighboring half, removing the serial
        # matmul1 -> gelu -> matmul2 drain bubble inside a grid step.
        for s in range(split):
            lo = s * th  # static, lane-aligned (th is a multiple of 128)
            h = jnp.dot(x, wfc_ref[:, lo:lo + th],
                        preferred_element_type=jnp.float32)
            h = h + bfc_ref[:, lo:lo + th]        # bias add in f32
            h = _gelu_tanh(h)                     # f32 gelu (v5e lacks bf16 VPU/EUP)
            acc_ref[...] += jnp.dot(h.astype(wproj_ref.dtype),
                                    wproj_ref[lo:lo + th, :],
                                    preferred_element_type=jnp.float32)

        @pl.when(j == pl.num_programs(1) - 1)
        def _():
            o_ref[...] = acc_ref[...].astype(o_ref.dtype)

    return mlp_kernel


def _vmem_capacity_bytes():
    """Physical VMEM per core; conservative 64 MiB fallback (v7x-sized)."""
    try:
        info = pltpu.get_tpu_info()
        cap = getattr(info, "vmem_capacity_bytes", None)
        if cap:
            return int(cap)
    except Exception:
        pass
    return 64 << 20


def _vmem_footprint(tm, ti, H, nbytes):
    """Double-buffered tiles + f32 accumulator + in-kernel intermediates."""
    return (
        2 * tm * H * nbytes            # x tile (double-buffered)
        + 2 * H * ti * nbytes          # W_fc slab
        + 2 * ti * H * nbytes          # W_proj slab
        + 2 * 8 * ti * 4               # b_fc slab, padded to 8 sublanes, f32
        + 2 * 8 * H * 4                # b_proj, padded to 8 sublanes, f32
        + 2 * tm * H * nbytes          # output tile
        + tm * H * 4                   # f32 accumulator scratch
        + tm * ti * 4                  # f32 intermediate h (per step)
        + tm * ti * nbytes             # cast copy of h fed to the 2nd matmul
    )


def _select_tiles(S, H, I, nbytes, vmem_cap):
    """Pick the largest (tm, ti) that divide (S, I) and fit the VMEM budget.

    Prefer S/tm >= 2 so the 'parallel' seq axis can shard across 2 TCs (v7x).
    """
    budget = int(vmem_cap * 0.75)
    tm_cands = [t for t in (768, 512, 384, 256, 192, 128, 64, 32, 16, 8)
                if t <= S and S % t == 0]
    if S not in tm_cands:
        tm_cands.append(S)
    ti_cands = [t for t in (1024, 512, 256, 128)
                if t <= I and I % t == 0]
    if I not in ti_cands and I <= 1024:
        ti_cands.append(I)
    if not ti_cands:
        ti_cands = [I]

    best = None
    for tm in tm_cands:
        for ti in ti_cands:
            if _vmem_footprint(tm, ti, H, nbytes) > budget:
                continue
            balanced = (S // tm) >= 2      # megacore load-balance (v7x)
            key = (balanced, tm, ti)
            if best is None or key > best[0]:
                best = (key, tm, ti)
    if best is None:
        return min(tm_cands), min(ti_cands)
    return best[1], best[2]


def starcoder2_mlp(x, w_fc, b_fc, w_proj, b_proj, *,
                   tm=None, ti=None, compute_dtype=None):
    """x: [S, H]; w_fc: [H, I]; b_fc: [I]; w_proj: [I, H]; b_proj: [H].

    compute_dtype: dtype of the MXU operands (default: bf16 when x is f32).
    Accumulation, bias adds and gelu stay in f32.  Output dtype follows x.
    """
    S, H = x.shape
    I = w_fc.shape[1]

    if compute_dtype is None:
        # bf16 operands / f32 accumulation is the production recipe on all
        # listed generations; f32 operands would halve MXU throughput and
        # double weight HBM bytes.
        compute_dtype = (jnp.bfloat16 if jnp.dtype(x.dtype).itemsize >= 4
                         else x.dtype)
    nbytes = jnp.dtype(compute_dtype).itemsize

    vmem_cap = _vmem_capacity_bytes()
    auto_tm, auto_ti = _select_tiles(S, H, I, nbytes, vmem_cap)
    tm = auto_tm if tm is None else min(tm, S)
    ti = auto_ti if ti is None else min(ti, I)
    assert S % tm == 0, "seq must be divisible by the row tile"
    assert I % ti == 0, "intermediate must be divisible by the I tile"
    assert ti % 128 == 0 or ti == I, "I tile must be lane-aligned (128)"

    # Half-slab split inside a step (needs each half lane-aligned).
    split = 2 if (ti % 256 == 0) else 1

    x_c = x.astype(compute_dtype)
    w_fc_c = w_fc.astype(compute_dtype)
    w_proj_c = w_proj.astype(compute_dtype)
    # TODO(synk): v7x fp8 weight path (per-channel scales folded into the f32
    # epilogue) for decode-style bandwidth-bound calls.
    b_fc2 = b_fc.reshape(1, I).astype(jnp.float32)
    b_proj2 = b_proj.reshape(1, H).astype(jnp.float32)

    footprint = _vmem_footprint(tm, ti, H, nbytes)
    vmem_limit = min(int(footprint * 1.2) + (8 << 20), int(vmem_cap))

    # NOTE: on 128-MiB parts with headroom, pipeline_mode=pl.Buffered(3) on the
    # two weight BlockSpecs can further smooth weight-DMA jitter; left at the
    # default double-buffering here for portability (64-MiB v7x).
    grid = (S // tm, I // ti)
    return pl.pallas_call(
        _make_mlp_kernel(ti, split),
        out_shape=jax.ShapeDtypeStruct((S, H), x.dtype),
        grid_spec=pltpu.PrefetchScalarGridSpec(
            num_scalar_prefetch=0,
            grid=grid,
            in_specs=[
                pl.BlockSpec((tm, H), lambda i, j: (i, 0)),   # x tile (resident over j)
                pl.BlockSpec((H, ti), lambda i, j: (0, j)),   # W_fc slab
                pl.BlockSpec((1, ti), lambda i, j: (0, j)),   # b_fc slab
                pl.BlockSpec((ti, H), lambda i, j: (j, 0)),   # W_proj slab
                pl.BlockSpec((1, H), lambda i, j: (0, 0)),    # b_proj
            ],
            out_specs=pl.BlockSpec((tm, H), lambda i, j: (i, 0)),
            scratch_shapes=[pltpu.VMEM((tm, H), jnp.float32)],
        ),
        compiler_params=pltpu.CompilerParams(
            dimension_semantics=("parallel", "arbitrary"),
            vmem_limit_bytes=vmem_limit,
        ),
    )(x_c, w_fc_c, b_fc2, w_proj_c, b_proj2)


def starcoder2_mlp_ref(x, w_fc, b_fc, w_proj, b_proj):
    h = x @ w_fc + b_fc
    h = _gelu_tanh(h)
    return h @ w_proj + b_proj


if __name__ == "__main__":
    # Small Starcoder2-like config: hidden=256, intermediate=1024, seq=256.
    SEQ, HIDDEN, INTER = 256, 256, 1024

    key = jax.random.PRNGKey(0)
    kx, kwf, kbf, kwp, kbp = jax.random.split(key, 5)

    x = jax.random.normal(kx, (SEQ, HIDDEN), dtype=jnp.float32)

    # PyTorch nn.Linear weights are [out, in]; pre-transpose to [in, out].
    w_fc_t = jax.random.normal(kwf, (INTER, HIDDEN), dtype=jnp.float32) * 0.02
    b_fc = jax.random.normal(kbf, (INTER,), dtype=jnp.float32) * 0.02
    w_proj_t = jax.random.normal(kwp, (HIDDEN, INTER), dtype=jnp.float32) * 0.02
    b_proj = jax.random.normal(kbp, (HIDDEN,), dtype=jnp.float32) * 0.02

    w_fc = w_fc_t.T      # [HIDDEN, INTER]
    w_proj = w_proj_t.T  # [INTER, HIDDEN]

    # TODO(synk): LoRA adapter path (TensorParallelMultiAdapterLinear) is a
    # no-op when adapter_data is empty; not implemented here.

    ref = starcoder2_mlp_ref(x, w_fc, b_fc, w_proj, b_proj)

    # f32-operand path: strict correctness check of the tiled reduction and
    # half-slab split (forces ti != I so the j-reduction is exercised).
    out_f32 = starcoder2_mlp(x, w_fc, b_fc, w_proj, b_proj,
                             tm=128, ti=256, compute_dtype=jnp.float32)
    out_f32 = jax.block_until_ready(out_f32)
    assert out_f32.shape == (SEQ, HIDDEN)
    assert out_f32.dtype == x.dtype
    assert jnp.allclose(out_f32, ref, atol=1e-4, rtol=1e-4), "f32 mismatch"

    # Production path: auto-selected tiles, bf16 operands, f32 accumulation,
    # output dtype follows x (f32).
    out = starcoder2_mlp(x, w_fc, b_fc, w_proj, b_proj)
    out = jax.block_until_ready(out)
    assert out.shape == (SEQ, HIDDEN)
    assert out.dtype == x.dtype
    max_err = float(jnp.max(jnp.abs(out - ref)))
    assert max_err < 5e-2, f"bf16 mismatch (max abs err {max_err})"

    print("KERNEL_OK")
</pallas_src>

<mosaic_0001>
module attributes {stable_mosaic.version = 11 : i64} {
  func.func @mlp_kernel(%arg0: i32, %arg1: i32, %arg2: memref<128x256xf32, #tpu.memory_space<vmem>>, %arg3: memref<256x256xf32, #tpu.memory_space<vmem>>, %arg4: memref<1x256xf32, #tpu.memory_space<vmem>>, %arg5: memref<256x256xf32, #tpu.memory_space<vmem>>, %arg6: memref<1x256xf32, #tpu.memory_space<vmem>>, %arg7: memref<128x256xf32, #tpu.memory_space<vmem>>, %arg8: memref<128x256xf32, #tpu.memory_space<vmem>>) attributes {dimension_semantics = [#tpu.dimension_semantics<parallel>, #tpu.dimension_semantics<arbitrary>], iteration_bounds = array<i64: 2, 4>, scalar_prefetch = 0 : i64, scratch_operands = 1 : i64, tpu.core_type = #tpu.core_type<tc>, window_params = [{transform_indices = @transform_0, window_bounds = array<i64: 128, 256>}, {transform_indices = @transform_1, window_bounds = array<i64: 256, 256>}, {transform_indices = @transform_2, window_bounds = array<i64: 1, 256>}, {transform_indices = @transform_3, window_bounds = array<i64: 256, 256>}, {pipeline_mode = #tpu.pipeline_mode<synchronous>, transform_indices = @transform_4, window_bounds = array<i64: 1, 256>}, {transform_indices = @transform_5, window_bounds = array<i64: 128, 256>}]} {
    %c0_i32 = arith.constant 0 : i32
    %0 = arith.cmpi eq, %arg1, %c0_i32 : i32
    %1 = arith.extui %0 : i1 to i32
    %c0_i32_0 = arith.constant 0 : i32
    %2 = arith.cmpi ne, %1, %c0_i32_0 : i32
    scf.if %2 {
      %c0_33 = arith.constant 0 : index
      %c0_34 = arith.constant 0 : index
      %53 = vector.load %arg6[%c0_33, %c0_34] : memref<1x256xf32, #tpu.memory_space<vmem>>, vector<1x256xf32>
      %54 = vector.shape_cast %53 : vector<1x256xf32> to vector<1x256xf32>
      %55 = vector.broadcast %54 : vector<1x256xf32> to vector<128x256xf32>
      %c0_35 = arith.constant 0 : index
      %c0_36 = arith.constant 0 : index
      %56 = vector.load %arg8[%c0_35, %c0_36] : memref<128x256xf32, #tpu.memory_space<vmem>>, vector<128x256xf32>
      tpu.vector_store %arg8[%c0_35, %c0_36], %55 {strides = array<i32>} : memref<128x256xf32, #tpu.memory_space<vmem>>, vector<128x256xf32>,
    } else {
    }
    %c0 = arith.constant 0 : index
    %c0_1 = arith.constant 0 : index
    %3 = vector.load %arg2[%c0, %c0_1] : memref<128x256xf32, #tpu.memory_space<vmem>>, vector<128x256xf32>
    %c0_2 = arith.constant 0 : index
    %c0_3 = arith.constant 0 : index
    %4 = vector.load %arg3[%c0_2, %c0_3] : memref<256x256xf32, #tpu.memory_space<vmem>>, vector<256x128xf32>
    %cst = arith.constant dense<0.000000e+00> : vector<128x128xf32>
    %5 = tpu.matmul %3, %4, %cst {dimension_numbers = #tpu.dot_dimension_numbers<[1], [0], [0], [1], [0, 0, 1, 1], [], []>} : vector<128x256xf32>, vector<256x128xf32>, vector<128x128xf32> -> vector<128x128xf32>
    %c0_4 = arith.constant 0 : index
    %c0_5 = arith.constant 0 : index
    %6 = vector.load %arg4[%c0_4, %c0_5] : memref<1x256xf32, #tpu.memory_space<vmem>>, vector<1x128xf32>
    %7 = vector.broadcast %6 : vector<1x128xf32> to vector<128x128xf32>
    %8 = arith.addf %5, %7 : vector<128x128xf32>
    %cst_6 = arith.constant 5.000000e-01 : f32
    %9 = vector.broadcast %cst_6 : f32 to vector<128x128xf32>
    %10 = arith.mulf %9, %8 : vector<128x128xf32>
    %cst_7 = arith.constant 4.471500e-02 : f32
    %11 = vector.broadcast %cst_7 : f32 to vector<128x128xf32>
    %12 = arith.mulf %11, %8 : vector<128x128xf32>
    %13 = arith.mulf %12, %8 : vector<128x128xf32>
    %14 = arith.mulf %13, %8 : vector<128x128xf32>
    %15 = arith.addf %8, %14 : vector<128x128xf32>
    %cst_8 = arith.constant 0.797884583 : f32
    %16 = vector.broadcast %cst_8 : f32 to vector<128x128xf32>
    %17 = arith.mulf %16, %15 : vector<128x128xf32>
    %18 = math.tanh %17 : vector<128x128xf32>
    %cst_9 = arith.constant 1.000000e+00 : f32
    %19 = vector.broadcast %cst_9 : f32 to vector<128x128xf32>
    %20 = arith.addf %19, %18 : vector<128x128xf32>
    %21 = arith.mulf %10, %20 : vector<128x128xf32>
    %c0_10 = arith.constant 0 : index
    %c0_11 = arith.constant 0 : index
    %22 = vector.load %arg8[%c0_10, %c0_11] : memref<128x256xf32, #tpu.memory_space<vmem>>, vector<128x256xf32>
    %c0_12 = arith.constant 0 : index
    %c0_13 = arith.constant 0 : index
    %23 = vector.load %arg5[%c0_12, %c0_13] : memref<256x256xf32, #tpu.memory_space<vmem>>, vector<128x256xf32>
    %cst_14 = arith.constant dense<0.000000e+00> : vector<128x256xf32>
    %24 = tpu.matmul %21, %23, %cst_14 {dimension_numbers = #tpu.dot_dimension_numbers<[1], [0], [0], [1], [0, 0, 1, 1], [], []>} : vector<128x128xf32>, vector<128x256xf32>, vector<128x256xf32> -> vector<128x256xf32>
    %25 = arith.addf %22, %24 : vector<128x256xf32>
    %c0_15 = arith.constant 0 : index
    %c0_16 = arith.constant 0 : index
    %26 = vector.load %arg8[%c0_15, %c0_16] : memref<128x256xf32, #tpu.memory_space<vmem>>, vector<128x256xf32>
    tpu.vector_store %arg8[%c0_15, %c0_16], %25 {strides = array<i32>} : memref<128x256xf32, #tpu.memory_space<vmem>>, vector<128x256xf32>,
    %c0_17 = arith.constant 0 : index
    %c128 = arith.constant 128 : index
    %27 = vector.load %arg3[%c0_17, %c128] : memref<256x256xf32, #tpu.memory_space<vmem>>, vector<256x128xf32>
    %cst_18 = arith.constant dense<0.000000e+00> : vector<128x128xf32>
    %28 = tpu.matmul %3, %27, %cst_18 {dimension_numbers = #tpu.dot_dimension_numbers<[1], [0], [0], [1], [0, 0, 1, 1], [], []>} : vector<128x256xf32>, vector<256x128xf32>, vector<128x128xf32> -> vector<128x128xf32>
    %c0_19 = arith.constant 0 : index
    %c128_20 = arith.constant 128 : index
    %29 = vector.load %arg4[%c0_19, %c128_20] : memref<1x256xf32, #tpu.memory_space<vmem>>, vector<1x128xf32>
    %30 = vector.broadcast %29 : vector<1x128xf32> to vector<128x128xf32>
    %31 = arith.addf %28, %30 : vector<128x128xf32>
    %cst_21 = arith.constant 5.000000e-01 : f32
    %32 = vector.broadcast %cst_21 : f32 to vector<128x128xf32>
    %33 = arith.mulf %32, %31 : vector<128x128xf32>
    %cst_22 = arith.constant 4.471500e-02 : f32
    %34 = vector.broadcast %cst_22 : f32 to vector<128x128xf32>
    %35 = arith.mulf %34, %31 : vector<128x128xf32>
    %36 = arith.mulf %35, %31 : vector<128x128xf32>
    %37 = arith.mulf %36, %31 : vector<128x128xf32>
    %38 = arith.addf %31, %37 : vector<128x128xf32>
    %cst_23 = arith.constant 0.797884583 : f32
    %39 = vector.broadcast %cst_23 : f32 to vector<128x128xf32>
    %40 = arith.mulf %39, %38 : vector<128x128xf32>
    %41 = math.tanh %40 : vector<128x128xf32>
    %cst_24 = arith.constant 1.000000e+00 : f32
    %42 = vector.broadcast %cst_24 : f32 to vector<128x128xf32>
    %43 = arith.addf %42, %41 : vector<128x128xf32>
    %44 = arith.mulf %33, %43 : vector<128x128xf32>
    %c0_25 = arith.constant 0 : index
    %c0_26 = arith.constant 0 : index
    %45 = vector.load %arg8[%c0_25, %c0_26] : memref<128x256xf32, #tpu.memory_space<vmem>>, vector<128x256xf32>
    %c128_27 = arith.constant 128 : index
    %c0_28 = arith.constant 0 : index
    %46 = vector.load %arg5[%c128_27, %c0_28] : memref<256x256xf32, #tpu.memory_space<vmem>>, vector<128x256xf32>
    %cst_29 = arith.constant dense<0.000000e+00> : vector<128x256xf32>
    %47 = tpu.matmul %44, %46, %cst_29 {dimension_numbers = #tpu.dot_dimension_numbers<[1], [0], [0], [1], [0, 0, 1, 1], [], []>} : vector<128x128xf32>, vector<128x256xf32>, vector<128x256xf32> -> vector<128x256xf32>
    %48 = arith.addf %45, %47 : vector<128x256xf32>
    %c0_30 = arith.constant 0 : index
    %c0_31 = arith.constant 0 : index
    %49 = vector.load %arg8[%c0_30, %c0_31] : memref<128x256xf32, #tpu.memory_space<vmem>>, vector<128x256xf32>
    tpu.vector_store %arg8[%c0_30, %c0_31], %48 {strides = array<i32>} : memref<128x256xf32, #tpu.memory_space<vmem>>, vector<128x256xf32>,
    %c3_i32 = arith.constant 3 : i32
    %50 = arith.cmpi eq, %arg1, %c3_i32 : i32
    %51 = arith.extui %50 : i1 to i32
    %c0_i32_32 = arith.constant 0 : i32
    %52 = arith.cmpi ne, %51, %c0_i32_32 : i32
    scf.if %52 {
      %c0_33 = arith.constant 0 : index
      %c0_34 = arith.constant 0 : index
      %53 = vector.load %arg8[%c0_33, %c0_34] : memref<128x256xf32, #tpu.memory_space<vmem>>, vector<128x256xf32>
      %c0_35 = arith.constant 0 : index
      %c0_36 = arith.constant 0 : index
      %54 = vector.load %arg7[%c0_35, %c0_36] : memref<128x256xf32, #tpu.memory_space<vmem>>, vector<128x256xf32>
      tpu.vector_store %arg7[%c0_35, %c0_36], %53 {strides = array<i32>} : memref<128x256xf32, #tpu.memory_space<vmem>>, vector<128x256xf32>,
    } else {
    }
    return
  }
  func.func @transform_0(%arg0: i32, %arg1: i32) -> (i32, i32) {
    %c0_i32 = arith.constant 0 : i32
    %c0_i32_0 = arith.constant 0 : i32
    return %arg0, %c0_i32 : i32, i32
  }
  func.func @transform_1(%arg0: i32, %arg1: i32) -> (i32, i32) {
    %c0_i32 = arith.constant 0 : i32
    %c0_i32_0 = arith.constant 0 : i32
    return %c0_i32, %arg1 : i32, i32
  }
  func.func @transform_2(%arg0: i32, %arg1: i32) -> (i32, i32) {
    %c0_i32 = arith.constant 0 : i32
    %c0_i32_0 = arith.constant 0 : i32
    return %c0_i32, %arg1 : i32, i32
  }
  func.func @transform_3(%arg0: i32, %arg1: i32) -> (i32, i32) {
    %c0_i32 = arith.constant 0 : i32
    %c0_i32_0 = arith.constant 0 : i32
    return %arg1, %c0_i32 : i32, i32
  }
  func.func @transform_4(%arg0: i32, %arg1: i32) -> (i32, i32) {
    %c0_i32 = arith.constant 0 : i32
    %c0_i32_0 = arith.constant 0 : i32
    %c0_i32_1 = arith.constant 0 : i32
    return %c0_i32, %c0_i32_0 : i32, i32
  }
  func.func @transform_5(%arg0: i32, %arg1: i32) -> (i32, i32) {
    %c0_i32 = arith.constant 0 : i32
    %c0_i32_0 = arith.constant 0 : i32
    return %arg0, %c0_i32 : i32, i32
  }
}

</mosaic_0001>

<bundles_post_ra>
// kernel: tpu_custom_call.1
= control target key start
LH: loop header
LB: loop body
LE: loop exit
PB: predicated region body
PF: predicated region fallthrough
CT: control target
= control target key end

     0   :  { %s3078_s0 = inlined_call_operand.hbm [shape: f32[256,256], index: 0, kind: input, shape index: {}]   ;;  %s3079_s1 = inlined_call_operand.hbm [shape: f32[256,1024], index: 1, kind: input, shape index: {}]   ;;  %s3080_s2 = inlined_call_operand.hbm [shape: f32[1,1024], index: 2, kind: input, shape index: {}]   ;;  %s3081_s3 = inlined_call_operand.hbm [shape: f32[1024,256], index: 3, kind: input, shape index: {}]   ;;  %s3082_s4 = inlined_call_operand.vmem [shape: f32[1,256], index: 4, kind: input, shape index: {}]   ;;  %s3083_s5 = inlined_call_operand.hbm [shape: f32[256,256], index: 5, kind: output, shape index: {}]  }
   0x1   :  { %3102 = sst [smem:[#allocation29_spill]] %s3078_s0 }
   0x2   :  { %3103 = sst [smem:[#allocation30_spill]] %s3079_s1 }
   0x3   :  { %3104 = sst [smem:[#allocation31_spill]] %s3082_s4 }
   0x4   :  { %3105 = sst [smem:[#allocation32_spill]] %s3083_s5 }
   0x5   :  { %10 = vsyncpa [#allocation4], 0 }
   0x6   :  { %12 = vsyncpa [#allocation4 + $0x1], 0 }
   0x7   :  { %13 = vsyncpa [#allocation7], 0 }
   0x8   :  { %15 = vsyncpa [#allocation7 + $0x1], 0 }
   0x9   :  { %16 = vsyncpa [#allocation10], 0 }
   0xa   :  { %18 = vsyncpa [#allocation10 + $0x1], 0 }
   0xb   :  { %19 = vsyncpa [#allocation5], 0 }
   0xc   :  { %21 = vsyncpa [#allocation5 + $0x1], 0  ;;  %s2342_s18 = smov 0   ;;  %s2344_s19 = smov 0  }
   0xd   :  { %s2346_s20 = smov 0   ;;  %s2348_s21 = smov 0  }
   0xe   :  { %s2350_s22 = smov 0   ;;  %s2352_s23 = smov 0  }
   0xf   :  { %s2354_s24 = smov 0   ;;  %s2356_s25 = smov 0  }
  0x10   :  { %s2358_s26 = smov 0   ;;  %s2360_s27 = smov 0  }
  0x11   :  { %s2362_s28 = smov 0  }
  0x12 LB: > { %3106 = sst [smem:[#allocation16_spill]] %s2273_s20  ;;  %p54_p0 = scmp.eq.s32.totalorder %s2305_s28, 0  ;;  %s2305_s28 = sphi %s2362_s28, %s27_s28   ;;  %s2301_s27 = sphi %s2360_s27, %s3148_s27   ;;  %s2297_s26 = sphi %s2358_s26, %s3155_s26   ;;  %s2293_s25 = sphi %s2356_s25, %s3154_s25   ;;  %s2289_s24 = sphi %s2354_s24, %s3153_s24   ;;  %s2285_s23 = sphi %s2352_s23, %s3145_s23   ;;  %s2281_s22 = sphi %s2350_s22, %s3152_s22   ;;  %s2277_s21 = sphi %s2348_s21, %s3151_s21   ;;  %s2273_s20 = sphi %s2346_s20, %s3143_s20   ;;  %s2269_s19 = sphi %s2344_s19, %s3150_s19   ;;  %s2265_s18 = sphi %s2342_s18, %s3149_s18  }
  0x13   : > { %3107 = sst [smem:[#allocation17_spill]] %s2277_s21  ;;  %p79_p1 = scmp.ne.s32.totalorder %s2273_s20, %s2269_s19 }
  0x14   : > { %3108 = sst [smem:[#allocation18_spill]] %s2285_s23  ;;  %p85_p2 = scmp.ne.s32.totalorder %s2269_s19, %s2265_s18 }
  0x15   : > { %3109 = sst [smem:[#allocation19_spill]] %s2289_s24  ;;  %p3090_p3 = scmp.lt.s32.totalorder %s2305_s28, 8 }
  0x16   : > { %3110 = sst [smem:[#allocation20_spill]] %s2293_s25  ;;  %p81_p4 = por %p79_p1, %p54_p0 }
  0x17   : > { %3111 = sst [smem:[#allocation21_spill]] %s2301_s27  ;;  %s234_s30 = sand.u32 1, %s2305_s28  }
  0x18   : > { %3112 = sst [smem:[#allocation22_spill]] %s2305_s28  ;;  %s2408_s6 = sand.u32 1, %s2273_s20  }
  0x19   : > { %s3084_s7 = sshll.u32 %s2408_s6, 9  ;;  %s1862_s8 = sshll.u32 %s2297_s26, 4 }
  0x1a   : > { %s3113_s1 = sld [smem:[#allocation30_spill]]  ;;  %s238_s13 = scalar_lea.vmem [#allocation6], %s3084_s7 }
  0x1b   : > { %s246_s14 = sshll.u32 %s238_s13, 4  ;;  %p2419_p5 = pnand %p3090_p3, %p81_p4  ;;  %s247_s14 = int_to_ptr.vmem [resolvable:$true] %s246_s14 }
  0x1c   : > { %p1846_p6 = scmp.ge.s32.totalorder %s2305_s28, 1  ;;  %p296_p7 = scmp.lt.s32.totalorder %s2305_s28, 9 }
  0x1d   : > { %s2425_s16 = scalar_lea.sflag [#allocation7], %s234_s30  ;;  %s2307_s17 = smov 1024  }
  0x1e   : > { %s3087_s9 = smov 16   ;;  %p2432_p8 = pnand %p1846_p6, %p296_p7 }
  0x1f   : > { %s2437_s30 = sadd.s32 4294967295, %s2305_s28   ;;  %s36_s13 = sadd.s32 1, %s2297_s26 }
  0x20   : > { %s243_s11 = scalar_lea.hbm %s3113_s1, %s1862_s8  ;;  %s3085_s8 = smov 256  }
  0x21   : > { %s244_s12 = sshll.u32 %s243_s11, 4  ;;  %s1830_s11 = sadd.s32 4294967294, %s2305_s28   ;;  %s245_s12 = int_to_ptr.hbm [resolvable:$true] %s244_s12 }
  0x22   : > { %1883 = dma.hbm_to_vmem [thread:$0]  (!%p2419_p5), %s245_s12, 8192, %s247_s14, %s2425_s16, %s2307_s17, %s3085_s8, %s3087_s9  }
  0x23   : > { %s39_s7 = sadd.s32 1, %s2301_s27  ;;  %p37_p9 = scmp.ge.s32.totalorder %s36_s13, 4 }
  0x24   : > { %s46_s29 = sadd.s32 1, %s2285_s23  ;;  %p53_p10 = scmp.ne.s32.totalorder %s2285_s23, %s2281_s22 }
  0x25   : > { %p59_p11 = scmp.ne.s32.totalorder %s2281_s22, %s2277_s21  ;;  %s3157_s13 = smov (%p37_p9, %s36_s13), 0 }
  0x26   : > { %3116 = sst [smem:[#allocation23_spill]] %s3157_s13  ;;  %s3159_s7 = smov (!%p37_p9, %s39_s7), %s2301_s27 }
  0x27   : > { %p2455_p12 = por %p54_p0, %p53_p10  ;;  %p60_p13 = scmp.eq.s32.totalorder %s2437_s30, 0 }
  0x28   : > { %p41_p1 = scmp.ge.s32.totalorder %s3159_s7, 2  ;;  %s69_s14 = ssub.s32 %s2297_s26, %s3157_s13 }
  0x29   : > { %p2465_p4 = por %p60_p13, %p59_p11  ;;  %p70_p6 = scmp.eq.s32.totalorder %s69_s14, 0 }
  0x2a   : > { %s3161_s7 = smov (%p41_p1, %s3159_s7), 0  ;;  %s3120_s8 = sadd.s32 1, %s2273_s20 }
  0x2b   : > { %3119 = sst [smem:[#allocation24_spill]] %s3161_s7  ;;  %s43_s1 = ssub.s32 %s2301_s27, %s3161_s7 }
  0x2c   : > { %s2474_s9 = scalar_select %p70_p6, %s2273_s20, %s3120_s8  }
  0x2d   : > { %p2481_p0 = por %p85_p2, %p60_p13  ;;  %p44_p7 = scmp.eq.s32.totalorder %s43_s1, 0 }
  0x2e   : > { %3121 = sst [smem:[#allocation25_spill]] %s2474_s9  ;;  %p182_p9 = scmp.eq.s32.totalorder %s2437_s30, 7 }
  0x2f   : > { %p188_p3 = scmp.eq.s32.totalorder %s1830_s11, 7  ;;  %s211_s14 = sand.u32 1, %s2285_s23  }
  0x30   : > { %s2488_s13 = scalar_select %p44_p7, %s2285_s23, %s46_s29  }
  0x31   : > { %p2493_p1 = por %p182_p9, %p53_p10  ;;  %p2500_p2 = por %p188_p3, %p59_p11 }
  0x32   : > { %3123 = sst [smem:[#allocation26_spill]] %s2488_s13  ;;  %s1833_s7 = sshll.u32 %s211_s14, 8 }
  0x33   : > { %s3124_s8 = scalar_select %p2493_p1, 1, 0 }
  0x34   : > { %s3126_s18 = scalar_select %p2500_p2, 1, 0 }
  0x35   : > { %3125 = sst [smem:[#allocation27_spill]] %s3124_s8  ;;  %s1861_s9 = sshll.u32 %s2301_s27, 8 }
  0x36   : > { %3127 = sst [smem:[#allocation28_spill]] %s3126_s18  ;;  %s215_s11 = scalar_lea.vmem [#allocation3], %s1833_s7 }
  0x37   : > { %s3128_s0 = sld [smem:[#allocation29_spill]]  ;;  %s224_s29 = sshll.u32 %s215_s11, 4  ;;  %s225_s29 = int_to_ptr.vmem [resolvable:$true] %s224_s29 }
  0x38   : > { %p3129_p3 = scmp.lt.s32.totalorder %s2305_s28, 8  ;;  %s1840_s23 = sshll.u32 %s2408_s6, 1 }
  0x39   : > { %s1841_s18 = sshll.u32 %s2297_s26, 1  ;;  %s212_s21 = scalar_lea.sflag [#allocation4], %s211_s14 }
  0x3a   : > { %p1878_p10 = pnand %p3129_p3, %p2455_p12  ;;  %s3130_s27 = smov 16  }
  0x3b   : > { %s3131_s8 = smov 256   ;;  %s1864_s12 = sshll.u32 %s2297_s26, 9 }
  0x3c   : > { %s285_s28 = scalar_lea.hbm %s3081_s3, %s1864_s12  ;;  %s3132_s4 = sshll.u32 %s2408_s6, 9 }
  0x3d   : > { %s221_s25 = scalar_lea.hbm %s3128_s0, %s1861_s9  ;;  %s264_s9 = scalar_lea.hbm %s3080_s2, %s1841_s18 }
  0x3e   : > { %s222_s13 = sshll.u32 %s221_s25, 4  ;;  %s260_s25 = scalar_lea.vmem [#allocation8], %s1840_s23  ;;  %s223_s13 = int_to_ptr.hbm [resolvable:$true] %s222_s13 }
  0x3f   : > { %1880 = dma.hbm_to_vmem [thread:$0]  (!%p1878_p10), %s223_s13, 4096, %s225_s29, %s212_s21, %s3131_s8, %s3131_s8, %s3130_s27  }
  0x40   : > { %s268_s1 = sshll.u32 %s260_s25, 4  ;;  %s266_s11 = sshll.u32 %s264_s9, 4  ;;  %s269_s1 = int_to_ptr.vmem [resolvable:$true] %s268_s1  ;;  %s267_s11 = int_to_ptr.hbm [resolvable:$true] %s266_s11 }
  0x41   : > { %1886 = dma.hbm_to_vmem [thread:$0]  (!%p2419_p5), %s267_s11, 32, %s269_s1, %s2425_s16  }
  0x42   : > { %s279_s24 = scalar_lea.vmem [#allocation9], %s3132_s4  ;;  %s286_s13 = sshll.u32 %s285_s28, 4  ;;  %s287_s13 = int_to_ptr.hbm [resolvable:$true] %s286_s13 }
  0x43   : > { %s288_s21 = sshll.u32 %s279_s24, 4  ;;  %s276_s29 = scalar_lea.sflag [#allocation10], %s2408_s6  ;;  %s289_s21 = int_to_ptr.vmem [resolvable:$true] %s288_s21 }
  0x44   : > { %1889 = dma.hbm_to_vmem [thread:$0]  (!%p2419_p5), %s287_s13, 8192, %s289_s21, %s276_s29, %s3131_s8, %s3131_s8, %s3130_s27  }
  0x45   : > { %300 = sbr.rel (%p2432_p8) target bundleno = 752 (0x2f0), region = 40  ;;  %s2538_s23 = sand.u32 (!%p2432_p8), 1, %s2281_s22  }
  0x46   : > { %s1847_s0 = sshll.u32 (!%p2432_p8), %s2538_s23, 8  ;;  %s303_s4 = scalar_lea.sflag (!%p2432_p8), [#allocation4], %s2538_s23 }
  0x47   : > { %s2542_s24 = scalar_lea.vmem (!%p2432_p8), [#allocation3], %s1847_s0 }
  0x4a   : > { %2248 = dma.done.wait (%p2465_p4), %s303_s4, 4096  }
  0x4b   : > { %2250 = vsyncadd (%p2465_p4), %s303_s4, 4294963200  ;;  %s312_s27 = sand.u32 1, %s2437_s30   ;;  %s314_s28 = sand.u32 1, %s2269_s19  }
  0x4c   : > { %s1848_s6 = sshll.u32 %s314_s28, 9  ;;  %s313_s15 = scalar_lea.sflag [#allocation7], %s312_s27 }
  0x4d   : > { %s2550_s16 = scalar_lea.vmem [#allocation6], %s1848_s6 }
  0x4e   : > { %2252 = dma.done.wait (%p2481_p0), %s313_s15, 8224  }
  0x4f   : > { %2254 = vsyncadd (%p2481_p0), %s313_s15, 4294959072  ;;  %s1849_s10 = sshll.u32 %s314_s28, 1  ;;  %s333_s17 = scalar_lea.sflag [#allocation10], %s314_s28 }
  0x50   : > { %s2556_s8 = scalar_lea.vmem [#allocation8], %s1849_s10  ;;  %s2558_s18 = scalar_lea.vmem [#allocation9], %s1848_s6 }
  0x51   : > { %2256 = dma.done.wait (%p2481_p0), %s333_s17, 8192  }
  0x52   : > { %2258 = vsyncadd (%p2481_p0), %s333_s17, 4294959104  ;;  %s2564_s30 = scalar_lea.vmem [#allocation11], %s1847_s0  ;;  %s3133_s20 = sld [smem:[#allocation19_spill]] }
  0x58   : > { %p1852_p5 = scmp.ne.s32.totalorder %s3133_s20, 0 }
  0x59   : > { %s3134_s25 = sld [smem:[#allocation31_spill]] (!%p1852_p5) }
  0x5a   : > { %387 = sbr.rel (%p1852_p5) target bundleno = 130 (0x82), region = 60 }
  0x5f   : > { %v388_v0 = vld [vmem:[%s3134_s25] sm:$0x3] }
  0x60   : > { %v390_v1 = vperm.slane %v388_v0, 0  ;;  %v391_v2 = vperm.slane %v388_v0, 1 }
  0x62   : > { %394 = vst [vmem:[#allocation2 + $0xb0] sm:$0xff] %v390_v1 }
  0x63   : > { %396 = vst [vmem:[#allocation2 + $0xd8] sm:$0xff] %v390_v1 }
  0x64   : > { %398 = vst [vmem:[#allocation2 + $0x50] sm:$0xff] %v390_v1 }
  0x65   : > { %400 = vst [vmem:[#allocation2 + $0x30] sm:$0xff] %v390_v1 }
  0x66   : > { %402 = vst [vmem:[#allocation2 + $0x80] sm:$0xff] %v390_v1 }
  0x67   : > { %404 = vst [vmem:[#allocation2 + $0xe8] sm:$0xff] %v390_v1 }
  0x68   : > { %406 = vst [vmem:[#allocation2 + $0x60] sm:$0xff] %v390_v1 }
  0x69   : > { %408 = vst [vmem:[#allocation2 + $0x8] sm:$0xff] %v390_v1 }
  0x6a   : > { %410 = vst [vmem:[#allocation2 + $0x38] sm:$0xff] %v390_v1 }
  0x6b   : > { %412 = vst [vmem:[#allocation2 + $0x40] sm:$0xff] %v390_v1 }
  0x6c   : > { %414 = vst [vmem:[#allocation2 + $0xe0] sm:$0xff] %v390_v1 }
  0x6d   : > { %416 = vst [vmem:[#allocation2 + $0x70] sm:$0xff] %v390_v1 }
  0x6e   : > { %418 = vst [vmem:[#allocation2 + $0xa8] sm:$0xff] %v390_v1 }
  0x6f   : > { %420 = vst [vmem:[#allocation2 + $0x10] sm:$0xff] %v390_v1 }
  0x70   : > { %422 = vst [vmem:[#allocation2 + $0xa0] sm:$0xff] %v390_v1 }
  0x71   : > { %424 = vst [vmem:[#allocation2 + $0x20] sm:$0xff] %v390_v1 }
  0x72   : > { %395 = vst [vmem:[#allocation2] sm:$0xff] %v391_v2 }
  0x73   : > { %397 = vst [vmem:[#allocation2 + $0x18] sm:$0xff] %v391_v2 }
  0x74   : > { %399 = vst [vmem:[#allocation2 + $0x68] sm:$0xff] %v391_v2 }
  0x75   : > { %401 = vst [vmem:[#allocation2 + $0x48] sm:$0xff] %v391_v2 }
  0x76   : > { %403 = vst [vmem:[#allocation2 + $0x88] sm:$0xff] %v391_v2 }
  0x77   : > { %405 = vst [vmem:[#allocation2 + $0xb8] sm:$0xff] %v391_v2 }
  0x78   : > { %407 = vst [vmem:[#allocation2 + $0xf0] sm:$0xff] %v391_v2 }
  0x79   : > { %409 = vst [vmem:[#allocation2 + $0x78] sm:$0xff] %v391_v2 }
  0x7a   : > { %411 = vst [vmem:[#allocation2 + $0x58] sm:$0xff] %v391_v2 }
  0x7b   : > { %413 = vst [vmem:[#allocation2 + $0xc8] sm:$0xff] %v391_v2 }
  0x7c   : > { %415 = vst [vmem:[#allocation2 + $0x90] sm:$0xff] %v391_v2 }
  0x7d   : > { %417 = vst [vmem:[#allocation2 + $0xc0] sm:$0xff] %v391_v2 }
  0x7e   : > { %419 = vst [vmem:[#allocation2 + $0xd0] sm:$0xff] %v391_v2 }
  0x7f   : > { %421 = vst [vmem:[#allocation2 + $0x28] sm:$0xff] %v391_v2 }
  0x80   : > { %423 = vst [vmem:[#allocation2 + $0xf8] sm:$0xff] %v391_v2 }
  0x81   : > { %425 = vst [vmem:[#allocation2 + $0x98] sm:$0xff] %v391_v2 }
  0x82 PF: > { %v473_v3 = vld [vmem:[%s2550_s16 + $0xf0] sm:$0xff]  ;;  %v472_v4 = vld [vmem:[%s2550_s16 + $0xe0] sm:$0xff]  ;;  %v2606_v36 = vld [vmem:[%s2542_s24 + $0x8] sm:$0xff]  ;;  %s3135_s5 = sld [smem:[#allocation19_spill]] }
  0x83   : > { %v489_v5 = vld [vmem:[%s2550_s16 + $0x1f0] sm:$0xff]  ;;  %494 = vmatpush.msra.mxu0 %v473_v3  ;;  %v488_v6 = vld [vmem:[%s2550_s16 + $0x1e0] sm:$0xff]  ;;  %v1041_v37 = vld [vmem:[%s2550_s16 + $0xf8] sm:$0xff] }
  0x84   : > { %559 = vmatpush.msra.mxu1 %v489_v5  ;;  %v471_v7 = vld [vmem:[%s2550_s16 + $0xd0] sm:$0xff]  ;;  %v470_v9 = vld [vmem:[%s2550_s16 + $0xc0] sm:$0xff]  ;;  %v1057_v38 = vld [vmem:[%s2550_s16 + $0x1f8] sm:$0xff] }
  0x85   : > { %v487_v8 = vld [vmem:[%s2550_s16 + $0x1d0] sm:$0xff]  ;;  %495 = vmatpush.msra.mxu0 %v472_v4  ;;  %v486_v10 = vld [vmem:[%s2550_s16 + $0x1c0] sm:$0xff]  ;;  %v1040_v39 = vld [vmem:[%s2550_s16 + $0xe8] sm:$0xff] }
  0x86   : > { %560 = vmatpush.msra.mxu1 %v488_v6  ;;  %v469_v11 = vld [vmem:[%s2550_s16 + $0xb0] sm:$0xff]  ;;  %v468_v13 = vld [vmem:[%s2550_s16 + $0xa0] sm:$0xff]  ;;  %v1056_v40 = vld [vmem:[%s2550_s16 + $0x1e8] sm:$0xff] }
  0x87   : > { %496 = vmatpush.msra.mxu0 %v471_v7  ;;  %v485_v12 = vld [vmem:[%s2550_s16 + $0x1b0] sm:$0xff]  ;;  %v484_v14 = vld [vmem:[%s2550_s16 + $0x1a0] sm:$0xff]  ;;  %v1039_v41 = vld [vmem:[%s2550_s16 + $0xd8] sm:$0xff] }
  0x88   : > { %561 = vmatpush.msra.mxu1 %v487_v8  ;;  %v467_v15 = vld [vmem:[%s2550_s16 + $0x90] sm:$0xff]  ;;  %v466_v17 = vld [vmem:[%s2550_s16 + $0x80] sm:$0xff]  ;;  %v1055_v42 = vld [vmem:[%s2550_s16 + $0x1d8] sm:$0xff]  ;;  %p1853_p8 = scmp.ne.s32.totalorder %s3135_s5, 3 }
  0x89   : > { %497 = vmatpush.msra.mxu0 %v470_v9  ;;  %v483_v16 = vld [vmem:[%s2550_s16 + $0x190] sm:$0xff]  ;;  %v482_v18 = vld [vmem:[%s2550_s16 + $0x180] sm:$0xff]  ;;  %v1038_v43 = vld [vmem:[%s2550_s16 + $0xc8] sm:$0xff] }
  0x8a   : > { %562 = vmatpush.msra.mxu1 %v486_v10  ;;  %v465_v19 = vld [vmem:[%s2550_s16 + $0x70] sm:$0xff]  ;;  %v464_v21 = vld [vmem:[%s2550_s16 + $0x60] sm:$0xff]  ;;  %v1054_v44 = vld [vmem:[%s2550_s16 + $0x1c8] sm:$0xff] }
  0x8b   : > { %498 = vmatpush.msra.mxu0 %v469_v11  ;;  %v481_v20 = vld [vmem:[%s2550_s16 + $0x170] sm:$0xff]  ;;  %v480_v22 = vld [vmem:[%s2550_s16 + $0x160] sm:$0xff]  ;;  %v2622_v46 = vld [vmem:[%s2542_s24 + $0x18] sm:$0xff] }
  0x8c   : > { %563 = vmatpush.msra.mxu1 %v485_v12  ;;  %v463_v23 = vld [vmem:[%s2550_s16 + $0x50] sm:$0xff]  ;;  %v462_v25 = vld [vmem:[%s2550_s16 + $0x40] sm:$0xff]  ;;  %v1037_v47 = vld [vmem:[%s2550_s16 + $0xb8] sm:$0xff] }
  0x8d   : > { %499 = vmatpush.msra.mxu0 %v468_v13  ;;  %v479_v24 = vld [vmem:[%s2550_s16 + $0x150] sm:$0xff]  ;;  %v478_v26 = vld [vmem:[%s2550_s16 + $0x140] sm:$0xff]  ;;  %v1053_v48 = vld [vmem:[%s2550_s16 + $0x1b8] sm:$0xff] }
  0x8e   : > { %564 = vmatpush.msra.mxu1 %v484_v14  ;;  %v461_v27 = vld [vmem:[%s2550_s16 + $0x30] sm:$0xff]  ;;  %v460_v29 = vld [vmem:[%s2550_s16 + $0x20] sm:$0xff]  ;;  %v1036_v49 = vld [vmem:[%s2550_s16 + $0xa8] sm:$0xff] }
  0x8f   : > { %500 = vmatpush.msra.mxu0 %v467_v15  ;;  %v477_v28 = vld [vmem:[%s2550_s16 + $0x130] sm:$0xff]  ;;  %v476_v30 = vld [vmem:[%s2550_s16 + $0x120] sm:$0xff]  ;;  %v1052_v50 = vld [vmem:[%s2550_s16 + $0x1a8] sm:$0xff] }
  0x90   : > { %565 = vmatpush.msra.mxu1 %v483_v16  ;;  %v459_v31 = vld [vmem:[%s2550_s16 + $0x10] sm:$0xff]  ;;  %v458_v33 = vld [vmem:[%s2550_s16] sm:$0xff]  ;;  %v2634_v52 = vld [vmem:[%s2542_s24 + $0x28] sm:$0xff] }
  0x91   : > { %501 = vmatpush.msra.mxu0 %v466_v17  ;;  %v475_v32 = vld [vmem:[%s2550_s16 + $0x110] sm:$0xff]  ;;  %v474_v34 = vld [vmem:[%s2550_s16 + $0x100] sm:$0xff]  ;;  %v1035_v53 = vld [vmem:[%s2550_s16 + $0x98] sm:$0xff] }
  0x92   : > { %566 = vmatpush.msra.mxu1 %v482_v18  ;;  %v2603_v35 = vld [vmem:[%s2542_s24] sm:$0xff]  ;;  %v2619_v45 = vld [vmem:[%s2542_s24 + $0x10] sm:$0xff]  ;;  %v1051_v54 = vld [vmem:[%s2550_s16 + $0x198] sm:$0xff] }
  0x93   : > { %502 = vmatpush.msra.mxu0 %v465_v19  ;;  %v2631_v51 = vld [vmem:[%s2542_s24 + $0x20] sm:$0xff]  ;;  %v2641_v55 = vld [vmem:[%s2542_s24 + $0x30] sm:$0xff]  ;;  %v2644_v56 = vld [vmem:[%s2542_s24 + $0x38] sm:$0xff] }
  0x94   : > { %567 = vmatpush.msra.mxu1 %v481_v20  ;;  %v1034_v57 = vld [vmem:[%s2550_s16 + $0x88] sm:$0xff]  ;;  %v2651_v59 = vld [vmem:[%s2542_s24 + $0x40] sm:$0xff]  ;;  %v1033_v61 = vld [vmem:[%s2550_s16 + $0x78] sm:$0xff] }
  0x95   : > { %503 = vmatpush.msra.mxu0 %v464_v21  ;;  %v1050_v58 = vld [vmem:[%s2550_s16 + $0x188] sm:$0xff]  ;;  %v1049_v62 = vld [vmem:[%s2550_s16 + $0x178] sm:$0xff]  ;;  %v2661_v63 = vld [vmem:[%s2542_s24 + $0x50] sm:$0xff] }
  0x96   : > { %568 = vmatpush.msra.mxu1 %v480_v22  ;;  %v2654_v60 = vld [vmem:[%s2542_s24 + $0x48] sm:$0xff]  ;;  %v2664_v0 = vld [vmem:[%s2542_s24 + $0x58] sm:$0xff]  ;;  %v2671_v3 = vld [vmem:[%s2542_s24 + $0x60] sm:$0xff] }
  0x97   : > { %504 = vmatpush.msra.mxu0 %v463_v23  ;;  %v1032_v1 = vld [vmem:[%s2550_s16 + $0x68] sm:$0xff]  ;;  %v1031_v5 = vld [vmem:[%s2550_s16 + $0x58] sm:$0xff]  ;;  %v2681_v7 = vld [vmem:[%s2542_s24 + $0x70] sm:$0xff] }
  0x98   : > { %569 = vmatpush.msra.mxu1 %v479_v24  ;;  %v1048_v2 = vld [vmem:[%s2550_s16 + $0x168] sm:$0xff]  ;;  %v1047_v6 = vld [vmem:[%s2550_s16 + $0x158] sm:$0xff]  ;;  %v2691_v11 = vld [vmem:[%s2542_s24 + $0x80] sm:$0xff] }
  0x99   : > { %505 = vmatpush.msra.mxu0 %v462_v25  ;;  %v2674_v4 = vld [vmem:[%s2542_s24 + $0x68] sm:$0xff]  ;;  %v2684_v8 = vld [vmem:[%s2542_s24 + $0x78] sm:$0xff]  ;;  %v2701_v15 = vld [vmem:[%s2542_s24 + $0x90] sm:$0xff] }
  0x9a   : > { %570 = vmatpush.msra.mxu1 %v478_v26  ;;  %v1030_v9 = vld [vmem:[%s2550_s16 + $0x48] sm:$0xff]  ;;  %v1029_v13 = vld [vmem:[%s2550_s16 + $0x38] sm:$0xff]  ;;  %v2711_v19 = vld [vmem:[%s2542_s24 + $0xa0] sm:$0xff] }
  0x9b   : > { %506 = vmatpush.msra.mxu0 %v461_v27  ;;  %v1046_v10 = vld [vmem:[%s2550_s16 + $0x148] sm:$0xff]  ;;  %v1045_v14 = vld [vmem:[%s2550_s16 + $0x138] sm:$0xff]  ;;  %v2721_v23 = vld [vmem:[%s2542_s24 + $0xb0] sm:$0xff] }
  0x9c   : > { %571 = vmatpush.msra.mxu1 %v477_v28  ;;  %v2694_v12 = vld [vmem:[%s2542_s24 + $0x88] sm:$0xff]  ;;  %v2704_v16 = vld [vmem:[%s2542_s24 + $0x98] sm:$0xff] }
  0x9d   : > { %507 = vmatpush.msra.mxu0 %v460_v29  ;;  %v1028_v17 = vld [vmem:[%s2550_s16 + $0x28] sm:$0xff]  ;;  %v1027_v21 = vld [vmem:[%s2550_s16 + $0x18] sm:$0xff] }
  0x9e   : > { %572 = vmatpush.msra.mxu1 %v476_v30  ;;  %v1044_v18 = vld [vmem:[%s2550_s16 + $0x128] sm:$0xff]  ;;  %v1043_v22 = vld [vmem:[%s2550_s16 + $0x118] sm:$0xff] }
  0x9f   : > { %508 = vmatpush.msra.mxu0 %v459_v31  ;;  %v2714_v20 = vld [vmem:[%s2542_s24 + $0xa8] sm:$0xff]  ;;  %v2724_v24 = vld [vmem:[%s2542_s24 + $0xb8] sm:$0xff] }
  0xa0   : > { %573 = vmatpush.msra.mxu1 %v475_v32  ;;  %v830_v25 = vld [vmem:[%s2558_s18 + $0xf0] sm:$0xff]  ;;  %v831_v26 = vld [vmem:[%s2558_s18 + $0xf8] sm:$0xff]  ;;  %v1026_v27 = vld [vmem:[%s2550_s16 + $0x8] sm:$0xff] }
  0xa1   : > { %509 = vmatpush.msra.mxu0 %v458_v33  ;;  %v828_v28 = vld [vmem:[%s2558_s18 + $0xe0] sm:$0xff]  ;;  %832 = vmatpush.msra.mxu2 %v830_v25  ;;  %v829_v29 = vld [vmem:[%s2558_s18 + $0xe8] sm:$0xff]  ;;  %v826_v31 = vld [vmem:[%s2558_s18 + $0xd0] sm:$0xff] }
  0xa2   : > { %574 = vmatpush.msra.mxu1 %v474_v34  ;;  %510 = vmatmul.f32.vlgmr.msra.gmra.mxu0 %v2603_v35  ;;  %v1042_v30 = vld [vmem:[%s2550_s16 + $0x108] sm:$0xff]  ;;  %v827_v32 = vld [vmem:[%s2558_s18 + $0xd8] sm:$0xff] }
  0xa3   : > { %575 = vmatmul.f32.vlgmr.msra.gmra.mxu1 %v2606_v36  ;;  %1062 = vmatpush.msrb.mxu0 %v1041_v37  ;;  %v2737_v33 = vld [vmem:[%s2542_s24 + $0xc0] sm:$0xff]  ;;  %v2740_v34 = vld [vmem:[%s2542_s24 + $0xc8] sm:$0xff] }
  0xa4   : > { %1127 = vmatpush.msrb.mxu1 %v1057_v38  ;;  %897 = vmatpush.msra.mxu3 %v831_v26  ;;  %v824_v37 = vld [vmem:[%s2558_s18 + $0xc0] sm:$0xff]  ;;  %v825_v38 = vld [vmem:[%s2558_s18 + $0xc8] sm:$0xff] }
  0xa5   : > { %1063 = vmatpush.msrb.mxu0 %v1040_v39  ;;  %833 = vmatpush.msra.mxu2 %v828_v28  ;;  %v822_v39 = vld [vmem:[%s2558_s18 + $0xb0] sm:$0xff]  ;;  %v800_v25 = vld [vmem:[%s2558_s18] sm:$0xff]  ;;  %v801_v26 = vld [vmem:[%s2558_s18 + $0x8] sm:$0xff] }
  0xa6   : > { %1128 = vmatpush.msrb.mxu1 %v1056_v40  ;;  %898 = vmatpush.msra.mxu3 %v829_v29  ;;  %v823_v40 = vld [vmem:[%s2558_s18 + $0xb8] sm:$0xff] }
  0xa7   : > { %1064 = vmatpush.msrb.mxu0 %v1039_v41  ;;  %834 = vmatpush.msra.mxu2 %v826_v31  ;;  %v820_v41 = vld [vmem:[%s2558_s18 + $0xa0] sm:$0xff]  ;;  %v1399_v28 = vld [vmem:[%s2558_s18 + $0x1f8] sm:$0xff] }
  0xa8   : > { %1129 = vmatpush.msrb.mxu1 %v1055_v42  ;;  %899 = vmatpush.msra.mxu3 %v827_v32  ;;  %v821_v42 = vld [vmem:[%s2558_s18 + $0xa8] sm:$0xff]  ;;  %v2797_v29 = vld [vmem:[%s2556_s8] ss:$0 sm:$0xff] }
  0xa9   : > { %1065 = vmatpush.msrb.mxu0 %v1038_v43  ;;  %835 = vmatpush.msra.mxu2 %v824_v37  ;;  %v818_v43 = vld [vmem:[%s2558_s18 + $0x90] sm:$0xff] }
  0xaa   : > { %1130 = vmatpush.msrb.mxu1 %v1054_v44  ;;  %513 = vmatmul.f32.gmra.mxu0 %v2619_v45  ;;  %v819_v44 = vld [vmem:[%s2558_s18 + $0x98] sm:$0xff] }
  0xab   : > { %578 = vmatmul.f32.gmra.mxu1 %v2622_v46  ;;  %1066 = vmatpush.msrb.mxu0 %v1037_v47  ;;  %v2753_v47 = vld [vmem:[%s2542_s24 + $0xd0] sm:$0xff] }
  0xac   : > { %1131 = vmatpush.msrb.mxu1 %v1053_v48  ;;  %900 = vmatpush.msra.mxu3 %v825_v38  ;;  %v2756_v48 = vld [vmem:[%s2542_s24 + $0xd8] sm:$0xff]  ;;  %v1396_v38 = vld [vmem:[%s2558_s18 + $0x1e0] sm:$0xff] }
  0xad   : > { %1067 = vmatpush.msrb.mxu0 %v1036_v49  ;;  %836 = vmatpush.msra.mxu2 %v822_v39  ;;  %v816_v49 = vld [vmem:[%s2558_s18 + $0x80] sm:$0xff]  ;;  %v1397_v39 = vld [vmem:[%s2558_s18 + $0x1e8] sm:$0xff] }
  0xae   : > { %1132 = vmatpush.msrb.mxu1 %v1052_v50  ;;  %901 = vmatpush.msra.mxu3 %v823_v40  ;;  %v817_v50 = vld [vmem:[%s2558_s18 + $0x88] sm:$0xff] }
  0xaf   : > { %1068 = vmatpush.msrb.mxu0 %v1035_v53  ;;  %837 = vmatpush.msra.mxu2 %v820_v41  ;;  %v814_v53 = vld [vmem:[%s2558_s18 + $0x70] sm:$0xff] }
  0xb0   : > { %1133 = vmatpush.msrb.mxu1 %v1051_v54  ;;  %902 = vmatpush.msra.mxu3 %v821_v42  ;;  %v815_v54 = vld [vmem:[%s2558_s18 + $0x78] sm:$0xff] }
  0xb1   : > { %1069 = vmatpush.msrb.mxu0 %v1034_v57  ;;  %838 = vmatpush.msra.mxu2 %v818_v43  ;;  %v812_v57 = vld [vmem:[%s2558_s18 + $0x60] sm:$0xff] }
  0xb2   : > { %516 = vmatmul.f32.gmra.mxu0 %v2631_v51  ;;  %1134 = vmatpush.msrb.mxu1 %v1050_v58  ;;  %v813_v58 = vld [vmem:[%s2558_s18 + $0x68] sm:$0xff] }
  0xb3   : > { %581 = vmatmul.f32.gmra.mxu1 %v2634_v52  ;;  %1070 = vmatpush.msrb.mxu0 %v1033_v61  ;;  %v810_v61 = vld [vmem:[%s2558_s18 + $0x50] sm:$0xff] }
  0xb4   : > { %1135 = vmatpush.msrb.mxu1 %v1049_v62  ;;  %903 = vmatpush.msra.mxu3 %v819_v44  ;;  %v811_v62 = vld [vmem:[%s2558_s18 + $0x58] sm:$0xff] }
  0xb5   : > { %1071 = vmatpush.msrb.mxu0 %v1032_v1  ;;  %839 = vmatpush.msra.mxu2 %v816_v49  ;;  %v2769_v1 = vld [vmem:[%s2542_s24 + $0xe0] sm:$0xff] }
  0xb6   : > { %1136 = vmatpush.msrb.mxu1 %v1048_v2  ;;  %904 = vmatpush.msra.mxu3 %v817_v50  ;;  %v2772_v2 = vld [vmem:[%s2542_s24 + $0xe8] sm:$0xff] }
  0xb7   : > { %1072 = vmatpush.msrb.mxu0 %v1031_v5  ;;  %840 = vmatpush.msra.mxu2 %v814_v53  ;;  %v808_v5 = vld [vmem:[%s2558_s18 + $0x40] sm:$0xff]  ;;  %v1394_v53 = vld [vmem:[%s2558_s18 + $0x1d0] sm:$0xff] }
  0xb8   : > { %1137 = vmatpush.msrb.mxu1 %v1047_v6  ;;  %905 = vmatpush.msra.mxu3 %v815_v54  ;;  %v809_v6 = vld [vmem:[%s2558_s18 + $0x48] sm:$0xff] }
  0xb9   : > { %1073 = vmatpush.msrb.mxu0 %v1030_v9  ;;  %841 = vmatpush.msra.mxu2 %v812_v57  ;;  %v806_v9 = vld [vmem:[%s2558_s18 + $0x30] sm:$0xff] }
  0xba   : > { %519 = vmatmul.f32.gmra.mxu0 %v2641_v55  ;;  %1138 = vmatpush.msrb.mxu1 %v1046_v10  ;;  %v807_v10 = vld [vmem:[%s2558_s18 + $0x38] sm:$0xff] }
  0xbb   : > { %584 = vmatmul.f32.gmra.mxu1 %v2644_v56  ;;  %1074 = vmatpush.msrb.mxu0 %v1029_v13  ;;  %v804_v13 = vld [vmem:[%s2558_s18 + $0x20] sm:$0xff] }
  0xbc   : > { %1139 = vmatpush.msrb.mxu1 %v1045_v14  ;;  %906 = vmatpush.msra.mxu3 %v813_v58  ;;  %v805_v14 = vld [vmem:[%s2558_s18 + $0x28] sm:$0xff] }
  0xbd   : > { %1075 = vmatpush.msrb.mxu0 %v1028_v17  ;;  %842 = vmatpush.msra.mxu2 %v810_v61  ;;  %v802_v17 = vld [vmem:[%s2558_s18 + $0x10] sm:$0xff] }
  0xbe   : > { %1140 = vmatpush.msrb.mxu1 %v1044_v18  ;;  %907 = vmatpush.msra.mxu3 %v811_v62  ;;  %v803_v18 = vld [vmem:[%s2558_s18 + $0x18] sm:$0xff] }
  0xbf   : > { %1076 = vmatpush.msrb.mxu0 %v1027_v21  ;;  %843 = vmatpush.msra.mxu2 %v808_v5  ;;  %v2785_v21 = vld [vmem:[%s2542_s24 + $0xf0] sm:$0xff] }
  0xc0   : > { %1141 = vmatpush.msrb.mxu1 %v1043_v22  ;;  %908 = vmatpush.msra.mxu3 %v809_v6  ;;  %v2788_v22 = vld [vmem:[%s2542_s24 + $0xf8] sm:$0xff] }
  0xc1   : > { %1077 = vmatpush.msrb.mxu0 %v1026_v27  ;;  %844 = vmatpush.msra.mxu2 %v806_v9  ;;  %v1398_v27 = vld [vmem:[%s2558_s18 + $0x1f0] sm:$0xff] }
  0xc2   : > { %522 = vmatmul.f32.gmra.mxu0 %v2651_v59  ;;  %1142 = vmatpush.msrb.mxu1 %v1042_v30 }
  0xc3   : > { %587 = vmatmul.f32.gmra.mxu1 %v2654_v60  ;;  %909 = vmatpush.msra.mxu3 %v807_v10  ;;  %v1393_v10 = vld [vmem:[%s2558_s18 + $0x1c8] sm:$0xff] }
  0xc4   : > { %845 = vmatpush.msra.mxu2 %v804_v13 }
  0xc5   : > { %910 = vmatpush.msra.mxu3 %v805_v14 }
  0xc6   : > { %846 = vmatpush.msra.mxu2 %v802_v17 }
  0xc7   : > { %911 = vmatpush.msra.mxu3 %v803_v18 }
  0xc8   : > { %847 = vmatpush.msra.mxu2 %v800_v25 }
  0xc9   : > { %912 = vmatpush.msra.mxu3 %v801_v26 }
  0xca   : > { %525 = vmatmul.f32.gmra.mxu0 %v2661_v63  ;;  %1400 = vmatpush.msrb.mxu2 %v1398_v27 }
  0xcb   : > { %590 = vmatmul.f32.gmra.mxu1 %v2664_v0  ;;  %1465 = vmatpush.msrb.mxu3 %v1399_v28 }
  0xcc   : > { %1401 = vmatpush.msrb.mxu2 %v1396_v38  ;;  %v1390_v38 = vld [vmem:[%s2558_s18 + $0x1b0] sm:$0xff] }
  0xcd   : > { %1466 = vmatpush.msrb.mxu3 %v1397_v39 }
  0xce   : > { %1402 = vmatpush.msrb.mxu2 %v1394_v53 }
  0xd2   : > { %528 = vmatmul.f32.gmra.mxu0 %v2671_v3 }
  0xd3   : > { %593 = vmatmul.f32.gmra.mxu1 %v2674_v4 }
  0xda   : > { %531 = vmatmul.f32.gmra.mxu0 %v2681_v7 }
  0xdb   : > { %596 = vmatmul.f32.gmra.mxu1 %v2684_v8 }
  0xe2   : > { %534 = vmatmul.f32.gmra.mxu0 %v2691_v11 }
  0xe3   : > { %599 = vmatmul.f32.gmra.mxu1 %v2694_v12 }
  0xea   : > { %537 = vmatmul.f32.gmra.mxu0 %v2701_v15 }
  0xeb   : > { %602 = vmatmul.f32.gmra.mxu1 %v2704_v16 }
  0xf2   : > { %540 = vmatmul.f32.gmra.mxu0 %v2711_v19 }
  0xf3   : > { %605 = vmatmul.f32.gmra.mxu1 %v2714_v20 }
  0xfa   : > { %543 = vmatmul.f32.gmra.mxu0 %v2721_v23 }
  0xfb   : > { %608 = vmatmul.f32.gmra.mxu1 %v2724_v24 }
 0x102   : > { %546 = vmatmul.f32.gmra.mxu0 %v2737_v33 }
 0x103   : > { %611 = vmatmul.f32.gmra.mxu1 %v2740_v34 }
 0x10a   : > { %549 = vmatmul.f32.gmra.mxu0 %v2753_v47 }
 0x10b   : > { %614 = vmatmul.f32.gmra.mxu1 %v2756_v48 }
 0x112   : > { %552 = vmatmul.f32.gmra.mxu0 %v2769_v1 }
 0x113   : > { %617 = vmatmul.f32.gmra.mxu1 %v2772_v2 }
 0x11a   : > { %555 = vmatmul.f32.gmra.mxu0 %v2785_v21 }
 0x11b   : > { %620 = vmatmul.f32.gmra.mxu1 %v2788_v22 }
 0x11f   : > { %v511_v30 = vpop.f32.mrf.mxu0 }
 0x120   : > { %v576_v31 = vpop.f32.mrf.mxu1  ;;  %v512_v32 = vadd.f32 %v2797_v29, %v511_v30 }
 0x122   : > { %v577_v37 = vadd.f32 %v576_v31, %v512_v32  ;;  %1078 = vmatmul.f32.vlgmr.msrb.gmra.mxu0 %v2603_v35 }
 0x123   : > { %1143 = vmatmul.f32.vlgmr.msrb.gmra.mxu1 %v2606_v36  ;;  %v1395_v36 = vld [vmem:[%s2558_s18 + $0x1d8] sm:$0xff] }
 0x124   : > { %v640_v40 = vmul.f32 0.044715, %v577_v37  ;;  %1467 = vmatpush.msrb.mxu3 %v1395_v36  ;;  %v624_v18 = vmul.f32 0.5, %v577_v37 }
 0x126   : > { %v656_v41 = vmul.f32 %v640_v40, %v577_v37  ;;  %1468 = vmatpush.msrb.mxu3 %v1393_v10 }
 0x127   : > { %v514_v42 = vpop.f32.mrf.mxu0 }
 0x128   : > { %v579_v43 = vpop.f32.mrf.mxu1  ;;  %v515_v44 = vadd.f32 %v2797_v29, %v514_v42  ;;  %v672_v49 = vmul.f32 %v656_v41, %v577_v37 }
 0x12a   : > { %v580_v50 = vadd.f32 %v579_v43, %v515_v44  ;;  %1081 = vmatmul.f32.gmra.mxu0 %v2619_v45  ;;  %v688_v35 = vadd.f32 %v672_v49, %v577_v37  ;;  %v1391_v37 = vld [vmem:[%s2558_s18 + $0x1b8] sm:$0xff] }
 0x12b   : > { %1146 = vmatmul.f32.gmra.mxu1 %v2622_v46  ;;  %v1392_v46 = vld [vmem:[%s2558_s18 + $0x1c0] sm:$0xff]  ;;  %1469 = vmatpush.msrb.mxu3 %v1391_v37 }
 0x12c   : > { %v704_v54 = vmul.f32 0.7978846, %v688_v35  ;;  %v641_v57 = vmul.f32 0.044715, %v580_v50  ;;  %1403 = vmatpush.msrb.mxu2 %v1392_v46  ;;  %v625_v42 = vmul.f32 0.5, %v580_v50 }
 0x12e   : > { %1991 = vtanh.f32 %v704_v54  ;;  %v657_v58 = vmul.f32 %v641_v57, %v580_v50  ;;  %1404 = vmatpush.msrb.mxu2 %v1390_v38  ;;  %v1388_v57 = vld [vmem:[%s2558_s18 + $0x1a0] sm:$0xff] }
 0x12f   : > { %v517_v61 = vpop.f32.mrf.mxu0 }
 0x130   : > { %v582_v62 = vpop.f32.mrf.mxu1  ;;  %v518_v5 = vadd.f32 %v2797_v29, %v517_v61  ;;  %v673_v6 = vmul.f32 %v657_v58, %v580_v50  ;;  %1405 = vmatpush.msrb.mxu2 %v1388_v57 }
 0x132   : > { %v583_v9 = vadd.f32 %v582_v62, %v518_v5  ;;  %1084 = vmatmul.f32.gmra.mxu0 %v2631_v51  ;;  %v689_v45 = vadd.f32 %v673_v6, %v580_v50  ;;  %v1389_v50 = vld [vmem:[%s2558_s18 + $0x1a8] sm:$0xff] }
 0x133   : > { %1149 = vmatmul.f32.gmra.mxu1 %v2634_v52  ;;  %1470 = vmatpush.msrb.mxu3 %v1389_v50  ;;  %v1382_v50 = vld [vmem:[%s2558_s18 + $0x170] sm:$0xff] }
 0x134   : > { %v1992_v13 = vpop.eup %1991  ;;  %v705_v14 = vmul.f32 0.7978846, %v689_v45  ;;  %v642_v17 = vmul.f32 0.044715, %v583_v9  ;;  %v626_v5 = vmul.f32 0.5, %v583_v9 }
 0x135   : > { %v736_v25 = vadd.f32 1.0, %v1992_v13 }
 0x136   : > { %1993 = vtanh.f32 %v705_v14  ;;  %v658_v26 = vmul.f32 %v642_v17, %v583_v9 }
 0x137   : > { %v520_v27 = vpop.f32.mrf.mxu0  ;;  %v752_v30 = vmul.f32 %v736_v25, %v624_v18  ;;  %v1386_v18 = vld [vmem:[%s2558_s18 + $0x190] sm:$0xff] }
 0x138   : > { %v585_v28 = vpop.f32.mrf.mxu1  ;;  %v521_v51 = vadd.f32 %v2797_v29, %v520_v27  ;;  %v674_v52 = vmul.f32 %v658_v26, %v583_v9  ;;  %1406 = vmatpush.msrb.mxu2 %v1386_v18 }
 0x139   : > { %848 = vmatmul.f32.vlgmr.msra.gmra.mxu2 %v752_v30  ;;  %913 = vmatmul.f32.vlgmr.msra.gmra.mxu3 %v752_v30 }
 0x13a   : > { %v586_v31 = vadd.f32 %v585_v28, %v521_v51  ;;  %1087 = vmatmul.f32.gmra.mxu0 %v2641_v55  ;;  %v690_v32 = vadd.f32 %v674_v52, %v583_v9  ;;  %v1387_v9 = vld [vmem:[%s2558_s18 + $0x198] sm:$0xff] }
 0x13b   : > { %1152 = vmatmul.f32.gmra.mxu1 %v2644_v56  ;;  %1471 = vmatpush.msrb.mxu3 %v1387_v9 }
 0x13c   : > { %v1994_v39 = vpop.eup %1993  ;;  %v706_v40 = vmul.f32 0.7978846, %v690_v32  ;;  %v643_v41 = vmul.f32 0.044715, %v586_v31  ;;  %v627_v28 = vmul.f32 0.5, %v586_v31 }
 0x13d   : > { %v737_v43 = vadd.f32 1.0, %v1994_v39 }
 0x13e   : > { %1995 = vtanh.f32 %v706_v40  ;;  %v659_v44 = vmul.f32 %v643_v41, %v586_v31  ;;  %v1384_v40 = vld [vmem:[%s2558_s18 + $0x180] sm:$0xff] }
 0x13f   : > { %v523_v49 = vpop.f32.mrf.mxu0  ;;  %v753_v53 = vmul.f32 %v737_v43, %v625_v42  ;;  %1407 = vmatpush.msrb.mxu2 %v1384_v40 }
 0x140   : > { %v588_v35 = vpop.f32.mrf.mxu1  ;;  %v524_v55 = vadd.f32 %v2797_v29, %v523_v49  ;;  %v675_v56 = vmul.f32 %v659_v44, %v586_v31 }
 0x141   : > { %851 = vmatmul.f32.gmra.mxu2 %v753_v53  ;;  %916 = vmatmul.f32.gmra.mxu3 %v753_v53 }
 0x142   : > { %v589_v36 = vadd.f32 %v588_v35, %v524_v55  ;;  %1090 = vmatmul.f32.gmra.mxu0 %v2651_v59  ;;  %v691_v54 = vadd.f32 %v675_v56, %v586_v31  ;;  %v1385_v31 = vld [vmem:[%s2558_s18 + $0x188] sm:$0xff]  ;;  %1408 = vmatpush.msrb.mxu2 %v1382_v50 }
 0x143   : > { %1155 = vmatmul.f32.gmra.mxu1 %v2654_v60  ;;  %1472 = vmatpush.msrb.mxu3 %v1385_v31 }
 0x144   : > { %v1996_v58 = vpop.eup %1995  ;;  %v707_v61 = vmul.f32 0.7978846, %v691_v54  ;;  %v644_v62 = vmul.f32 0.044715, %v589_v36  ;;  %v628_v44 = vmul.f32 0.5, %v589_v36 }
 0x145   : > { %v738_v6 = vadd.f32 1.0, %v1996_v58 }
 0x146   : > { %1997 = vtanh.f32 %v707_v61  ;;  %v660_v45 = vmul.f32 %v644_v62, %v589_v36 }
 0x147   : > { %v526_v46 = vpop.f32.mrf.mxu0  ;;  %v754_v13 = vmul.f32 %v738_v6, %v626_v5 }
 0x148   : > { %v591_v10 = vpop.f32.mrf.mxu1  ;;  %v527_v59 = vadd.f32 %v2797_v29, %v526_v46  ;;  %v676_v60 = vmul.f32 %v660_v45, %v589_v36 }
 0x149   : > { %854 = vmatmul.f32.gmra.mxu2 %v754_v13  ;;  %919 = vmatmul.f32.gmra.mxu3 %v754_v13 }
 0x14a   : > { %v592_v14 = vadd.f32 %v591_v10, %v527_v59  ;;  %1093 = vmatmul.f32.gmra.mxu0 %v2661_v63  ;;  %v692_v17 = vadd.f32 %v676_v60, %v589_v36  ;;  %v1383_v36 = vld [vmem:[%s2558_s18 + $0x178] sm:$0xff] }
 0x14b   : > { %1158 = vmatmul.f32.gmra.mxu1 %v2664_v0  ;;  %1473 = vmatpush.msrb.mxu3 %v1383_v36 }
 0x14c   : > { %v1998_v25 = vpop.eup %1997  ;;  %v708_v26 = vmul.f32 0.7978846, %v692_v17  ;;  %v645_v27 = vmul.f32 0.044715, %v592_v14  ;;  %v629_v5 = vmul.f32 0.5, %v592_v14  ;;  %v1380_v17 = vld [vmem:[%s2558_s18 + $0x160] sm:$0xff] }
 0x14d   : > { %v739_v30 = vadd.f32 1.0, %v1998_v25  ;;  %1409 = vmatpush.msrb.mxu2 %v1380_v17 }
 0x14e   : > { %1999 = vtanh.f32 %v708_v26  ;;  %v661_v51 = vmul.f32 %v645_v27, %v592_v14 }
 0x14f   : > { %v529_v52 = vpop.f32.mrf.mxu0  ;;  %v755_v38 = vmul.f32 %v739_v30, %v627_v28 }
 0x150   : > { %v594_v32 = vpop.f32.mrf.mxu1  ;;  %v530_v63 = vadd.f32 %v2797_v29, %v529_v52  ;;  %v677_v0 = vmul.f32 %v661_v51, %v592_v14 }
 0x151   : > { %857 = vmatmul.f32.gmra.mxu2 %v755_v38  ;;  %922 = vmatmul.f32.gmra.mxu3 %v755_v38 }
 0x152   : > { %v595_v37 = vadd.f32 %v594_v32, %v530_v63  ;;  %1096 = vmatmul.f32.gmra.mxu0 %v2671_v3  ;;  %v693_v39 = vadd.f32 %v677_v0, %v592_v14  ;;  %v1381_v14 = vld [vmem:[%s2558_s18 + $0x168] sm:$0xff]  ;;  %v1378_v63 = vld [vmem:[%s2558_s18 + $0x150] sm:$0xff]  ;;  %v1379_v0 = vld [vmem:[%s2558_s18 + $0x158] sm:$0xff] }
 0x153   : > { %1161 = vmatmul.f32.gmra.mxu1 %v2674_v4  ;;  %1474 = vmatpush.msrb.mxu3 %v1381_v14 }
 0x154   : > { %v2000_v41 = vpop.eup %1999  ;;  %v709_v42 = vmul.f32 0.7978846, %v693_v39  ;;  %v646_v43 = vmul.f32 0.044715, %v595_v37  ;;  %v630_v26 = vmul.f32 0.5, %v595_v37  ;;  %1410 = vmatpush.msrb.mxu2 %v1378_v63 }
 0x155   : > { %v740_v49 = vadd.f32 1.0, %v2000_v41  ;;  %1475 = vmatpush.msrb.mxu3 %v1379_v0 }
 0x156   : > { %2001 = vtanh.f32 %v709_v42  ;;  %v662_v35 = vmul.f32 %v646_v43, %v595_v37 }
 0x157   : > { %v532_v53 = vpop.f32.mrf.mxu0  ;;  %v756_v56 = vmul.f32 %v740_v49, %v628_v44 }
 0x158   : > { %v597_v55 = vpop.f32.mrf.mxu1  ;;  %v533_v3 = vadd.f32 %v2797_v29, %v532_v53  ;;  %v678_v4 = vmul.f32 %v662_v35, %v595_v37 }
 0x159   : > { %860 = vmatmul.f32.gmra.mxu2 %v756_v56  ;;  %925 = vmatmul.f32.gmra.mxu3 %v756_v56  ;;  %v1377_v56 = vld [vmem:[%s2558_s18 + $0x148] sm:$0xff] }
 0x15a   : > { %v598_v54 = vadd.f32 %v597_v55, %v533_v3  ;;  %1099 = vmatmul.f32.gmra.mxu0 %v2681_v7  ;;  %v694_v57 = vadd.f32 %v678_v4, %v595_v37  ;;  %v1376_v55 = vld [vmem:[%s2558_s18 + $0x140] sm:$0xff]  ;;  %1476 = vmatpush.msrb.mxu3 %v1377_v56 }
 0x15b   : > { %1164 = vmatmul.f32.gmra.mxu1 %v2684_v8  ;;  %1411 = vmatpush.msrb.mxu2 %v1376_v55  ;;  %v1368_v56 = vld [vmem:[%s2558_s18 + $0x100] sm:$0xff] }
 0x15c   : > { %v2002_v58 = vpop.eup %2001  ;;  %v710_v61 = vmul.f32 0.7978846, %v694_v57  ;;  %v647_v62 = vmul.f32 0.044715, %v598_v54  ;;  %v631_v31 = vmul.f32 0.5, %v598_v54 }
 0x15d   : > { %v741_v6 = vadd.f32 1.0, %v2002_v58 }
 0x15e   : > { %2003 = vtanh.f32 %v710_v61  ;;  %v663_v45 = vmul.f32 %v647_v62, %v598_v54 }
 0x15f   : > { %v535_v46 = vpop.f32.mrf.mxu0  ;;  %v757_v13 = vmul.f32 %v741_v6, %v629_v5 }
 0x160   : > { %v600_v10 = vpop.f32.mrf.mxu1  ;;  %v536_v7 = vadd.f32 %v2797_v29, %v535_v46  ;;  %v679_v8 = vmul.f32 %v663_v45, %v598_v54  ;;  %v1374_v45 = vld [vmem:[%s2558_s18 + $0x130] sm:$0xff]  ;;  %v1375_v46 = vld [vmem:[%s2558_s18 + $0x138] sm:$0xff] }
 0x161   : > { %863 = vmatmul.f32.gmra.mxu2 %v757_v13  ;;  %928 = vmatmul.f32.gmra.mxu3 %v757_v13 }
 0x162   : > { %v601_v59 = vadd.f32 %v600_v10, %v536_v7  ;;  %1102 = vmatmul.f32.gmra.mxu0 %v2691_v11  ;;  %v695_v60 = vadd.f32 %v679_v8, %v598_v54  ;;  %1412 = vmatpush.msrb.mxu2 %v1374_v45  ;;  %v2878_v45 = vld [vmem:[%s2556_s8 + $0x1] ss:$0 sm:$0xff] }
 0x163   : > { %1167 = vmatmul.f32.gmra.mxu1 %v2694_v12  ;;  %1477 = vmatpush.msrb.mxu3 %v1375_v46 }
 0x164   : > { %v2004_v18 = vpop.eup %2003  ;;  %v711_v9 = vmul.f32 0.7978846, %v695_v60  ;;  %v648_v25 = vmul.f32 0.044715, %v601_v59  ;;  %v632_v57 = vmul.f32 0.5, %v601_v59 }
 0x165   : > { %v742_v27 = vadd.f32 1.0, %v2004_v18 }
 0x166   : > { %2005 = vtanh.f32 %v711_v9  ;;  %v664_v28 = vmul.f32 %v648_v25, %v601_v59 }
 0x167   : > { %v538_v30 = vpop.f32.mrf.mxu0  ;;  %v758_v52 = vmul.f32 %v742_v27, %v630_v26 }
 0x168   : > { %v603_v51 = vpop.f32.mrf.mxu1  ;;  %v539_v11 = vadd.f32 %v2797_v29, %v538_v30  ;;  %v680_v12 = vmul.f32 %v664_v28, %v601_v59  ;;  %v1372_v30 = vld [vmem:[%s2558_s18 + $0x120] sm:$0xff] }
 0x169   : > { %866 = vmatmul.f32.gmra.mxu2 %v758_v52  ;;  %931 = vmatmul.f32.gmra.mxu3 %v758_v52 }
 0x16a   : > { %v604_v32 = vadd.f32 %v603_v51, %v539_v11  ;;  %1105 = vmatmul.f32.gmra.mxu0 %v2701_v15  ;;  %v696_v38 = vadd.f32 %v680_v12, %v601_v59  ;;  %1413 = vmatpush.msrb.mxu2 %v1372_v30  ;;  %v1373_v11 = vld [vmem:[%s2558_s18 + $0x128] sm:$0xff] }
 0x16b   : > { %1170 = vmatmul.f32.gmra.mxu1 %v2704_v16  ;;  %1478 = vmatpush.msrb.mxu3 %v1373_v11 }
 0x16c   : > { %v2006_v37 = vpop.eup %2005  ;;  %v712_v39 = vmul.f32 0.7978846, %v696_v38  ;;  %v649_v40 = vmul.f32 0.044715, %v604_v32  ;;  %v633_v8 = vmul.f32 0.5, %v604_v32 }
 0x16d   : > { %v743_v41 = vadd.f32 1.0, %v2006_v37 }
 0x16e   : > { %2007 = vtanh.f32 %v712_v39  ;;  %v665_v42 = vmul.f32 %v649_v40, %v604_v32  ;;  %v1370_v39 = vld [vmem:[%s2558_s18 + $0x110] sm:$0xff]  ;;  %v1371_v40 = vld [vmem:[%s2558_s18 + $0x118] sm:$0xff] }
 0x16f   : > { %v541_v43 = vpop.f32.mrf.mxu0  ;;  %v759_v49 = vmul.f32 %v743_v41, %v631_v31  ;;  %1414 = vmatpush.msrb.mxu2 %v1370_v39  ;;  %1479 = vmatpush.msrb.mxu3 %v1371_v40 }
 0x170   : > { %v606_v44 = vpop.f32.mrf.mxu1  ;;  %v542_v15 = vadd.f32 %v2797_v29, %v541_v43  ;;  %v681_v16 = vmul.f32 %v665_v42, %v604_v32 }
 0x171   : > { %869 = vmatmul.f32.gmra.mxu2 %v759_v49  ;;  %934 = vmatmul.f32.gmra.mxu3 %v759_v49 }
 0x172   : > { %v607_v35 = vadd.f32 %v606_v44, %v542_v15  ;;  %1108 = vmatmul.f32.gmra.mxu0 %v2711_v19  ;;  %v697_v53 = vadd.f32 %v681_v16, %v604_v32  ;;  %1415 = vmatpush.msrb.mxu2 %v1368_v56 }
 0x173   : > { %1173 = vmatmul.f32.gmra.mxu1 %v2714_v20 }
 0x174   : > { %v2008_v3 = vpop.eup %2007  ;;  %v713_v4 = vmul.f32 0.7978846, %v697_v53  ;;  %v650_v54 = vmul.f32 0.044715, %v607_v35  ;;  %v634_v51 = vmul.f32 0.5, %v607_v35 }
 0x175   : > { %v744_v50 = vadd.f32 1.0, %v2008_v3  ;;  %v1369_v3 = vld [vmem:[%s2558_s18 + $0x108] sm:$0xff] }
 0x176   : > { %2009 = vtanh.f32 %v713_v4  ;;  %v666_v36 = vmul.f32 %v650_v54, %v607_v35  ;;  %1480 = vmatpush.msrb.mxu3 %v1369_v3 }
 0x177   : > { %v544_v58 = vpop.f32.mrf.mxu0  ;;  %v760_v62 = vmul.f32 %v744_v50, %v632_v57 }
 0x178   : > { %v609_v61 = vpop.f32.mrf.mxu1  ;;  %v545_v19 = vadd.f32 %v2797_v29, %v544_v58  ;;  %v682_v20 = vmul.f32 %v666_v36, %v607_v35 }
 0x179   : > { %872 = vmatmul.f32.gmra.mxu2 %v760_v62  ;;  %937 = vmatmul.f32.gmra.mxu3 %v760_v62 }
 0x17a   : > { %v610_v5 = vadd.f32 %v609_v61, %v545_v19  ;;  %1111 = vmatmul.f32.gmra.mxu0 %v2721_v23  ;;  %v698_v6 = vadd.f32 %v682_v20, %v607_v35 }
 0x17b   : > { %1176 = vmatmul.f32.gmra.mxu1 %v2724_v24 }
 0x17c   : > { %v2010_v10 = vpop.eup %2009  ;;  %v714_v13 = vmul.f32 0.7978846, %v698_v6  ;;  %v651_v7 = vmul.f32 0.044715, %v610_v5  ;;  %v635_v43 = vmul.f32 0.5, %v610_v5 }
 0x17d   : > { %v745_v59 = vadd.f32 1.0, %v2010_v10 }
 0x17e   : > { %2011 = vtanh.f32 %v714_v13  ;;  %v667_v60 = vmul.f32 %v651_v7, %v610_v5 }
 0x17f   : > { %v547_v17 = vpop.f32.mrf.mxu0  ;;  %v761_v18 = vmul.f32 %v745_v59, %v633_v8 }
 0x180   : > { %v612_v14 = vpop.f32.mrf.mxu1  ;;  %v548_v23 = vadd.f32 %v2797_v29, %v547_v17  ;;  %v683_v24 = vmul.f32 %v667_v60, %v610_v5 }
 0x181   : > { %875 = vmatmul.f32.gmra.mxu2 %v761_v18  ;;  %940 = vmatmul.f32.gmra.mxu3 %v761_v18 }
 0x182   : > { %v613_v9 = vadd.f32 %v612_v14, %v548_v23  ;;  %1114 = vmatmul.f32.gmra.mxu0 %v2737_v33  ;;  %v699_v25 = vadd.f32 %v683_v24, %v610_v5 }
 0x183   : > { %1179 = vmatmul.f32.gmra.mxu1 %v2740_v34 }
 0x184   : > { %v2012_v26 = vpop.eup %2011  ;;  %v715_v27 = vmul.f32 0.7978846, %v699_v25  ;;  %v652_v28 = vmul.f32 0.044715, %v613_v9  ;;  %v636_v50 = vmul.f32 0.5, %v613_v9 }
 0x185   : > { %v746_v52 = vadd.f32 1.0, %v2012_v26 }
 0x186   : > { %2013 = vtanh.f32 %v715_v27  ;;  %v668_v12 = vmul.f32 %v652_v28, %v613_v9 }
 0x187   : > { %v550_v32 = vpop.f32.mrf.mxu0  ;;  %v762_v63 = vmul.f32 %v746_v52, %v634_v51 }
 0x188   : > { %v615_v38 = vpop.f32.mrf.mxu1  ;;  %v551_v33 = vadd.f32 %v2797_v29, %v550_v32  ;;  %v684_v34 = vmul.f32 %v668_v12, %v613_v9 }
 0x189   : > { %878 = vmatmul.f32.gmra.mxu2 %v762_v63  ;;  %943 = vmatmul.f32.gmra.mxu3 %v762_v63 }
 0x18a   : > { %v616_v0 = vadd.f32 %v615_v38, %v551_v33  ;;  %1117 = vmatmul.f32.gmra.mxu0 %v2753_v47  ;;  %v700_v37 = vadd.f32 %v684_v34, %v613_v9 }
 0x18b   : > { %1182 = vmatmul.f32.gmra.mxu1 %v2756_v48 }
 0x18c   : > { %v2014_v31 = vpop.eup %2013  ;;  %v716_v41 = vmul.f32 0.7978846, %v700_v37  ;;  %v653_v42 = vmul.f32 0.044715, %v616_v0  ;;  %v637_v13 = vmul.f32 0.5, %v616_v0 }
 0x18d   : > { %v747_v44 = vadd.f32 1.0, %v2014_v31 }
 0x18e   : > { %2015 = vtanh.f32 %v716_v41  ;;  %v669_v49 = vmul.f32 %v653_v42, %v616_v0 }
 0x18f   : > { %v553_v15 = vpop.f32.mrf.mxu0  ;;  %v763_v35 = vmul.f32 %v747_v44, %v635_v43 }
 0x190   : > { %v618_v16 = vpop.f32.mrf.mxu1  ;;  %v554_v47 = vadd.f32 %v2797_v29, %v553_v15  ;;  %v685_v48 = vmul.f32 %v669_v49, %v616_v0 }
 0x191   : > { %881 = vmatmul.f32.gmra.mxu2 %v763_v35  ;;  %946 = vmatmul.f32.gmra.mxu3 %v763_v35 }
 0x192   : > { %v619_v53 = vadd.f32 %v618_v16, %v554_v47  ;;  %1120 = vmatmul.f32.gmra.mxu0 %v2769_v1  ;;  %v701_v55 = vadd.f32 %v685_v48, %v616_v0 }
 0x193   : > { %1185 = vmatmul.f32.gmra.mxu1 %v2772_v2 }
 0x194   : > { %v2016_v4 = vpop.eup %2015  ;;  %v717_v54 = vmul.f32 0.7978846, %v701_v55  ;;  %v654_v57 = vmul.f32 0.044715, %v619_v53  ;;  %v638_v9 = vmul.f32 0.5, %v619_v53 }
 0x195   : > { %v748_v36 = vadd.f32 1.0, %v2016_v4 }
 0x196   : > { %2017 = vtanh.f32 %v717_v54  ;;  %v670_v58 = vmul.f32 %v654_v57, %v619_v53 }
 0x197   : > { %v556_v61 = vpop.f32.mrf.mxu0  ;;  %v764_v19 = vmul.f32 %v748_v36, %v636_v50 }
 0x198   : > { %v621_v62 = vpop.f32.mrf.mxu1  ;;  %v557_v1 = vadd.f32 %v2797_v29, %v556_v61  ;;  %v686_v20 = vmul.f32 %v670_v58, %v619_v53 }
 0x199   : > { %884 = vmatmul.f32.gmra.mxu2 %v764_v19  ;;  %949 = vmatmul.f32.gmra.mxu3 %v764_v19 }
 0x19a   : > { %v622_v2 = vadd.f32 %v621_v62, %v557_v1  ;;  %1123 = vmatmul.f32.gmra.mxu0 %v2785_v21  ;;  %v702_v5 = vadd.f32 %v686_v20, %v619_v53 }
 0x19b   : > { %1188 = vmatmul.f32.gmra.mxu1 %v2788_v22 }
 0x19c   : > { %v2018_v6 = vpop.eup %2017  ;;  %v718_v46 = vmul.f32 0.7978846, %v702_v5  ;;  %v655_v10 = vmul.f32 0.044715, %v622_v2  ;;  %v639_v33 = vmul.f32 0.5, %v622_v2 }
 0x19d   : > { %v749_v7 = vadd.f32 1.0, %v2018_v6 }
 0x19e   : > { %2019 = vtanh.f32 %v718_v46  ;;  %v671_v8 = vmul.f32 %v655_v10, %v622_v2 }
 0x19f   : > { %v1079_v59 = vpop.f32.mrf.mxu0  ;;  %v765_v29 = vmul.f32 %v749_v7, %v637_v13 }
 0x1a0   : > { %v1144_v60 = vpop.f32.mrf.mxu1  ;;  %v1080_v17 = vadd.f32 %v2878_v45, %v1079_v59  ;;  %v687_v14 = vmul.f32 %v671_v8, %v622_v2 }
 0x1a1   : > { %887 = vmatmul.f32.gmra.mxu2 %v765_v29  ;;  %952 = vmatmul.f32.gmra.mxu3 %v765_v29 }
 0x1a2   : > { %v1145_v21 = vadd.f32 %v1144_v60, %v1080_v17  ;;  %v703_v22 = vadd.f32 %v687_v14, %v622_v2 }
 0x1a4   : > { %v2020_v18 = vpop.eup %2019  ;;  %v1208_v23 = vmul.f32 0.044715, %v1145_v21  ;;  %v719_v24 = vmul.f32 0.7978846, %v703_v22  ;;  %v1192_v16 = vmul.f32 0.5, %v1145_v21 }
 0x1a5   : > { %v750_v25 = vadd.f32 1.0, %v2020_v18 }
 0x1a6   : > { %2021 = vtanh.f32 %v719_v24  ;;  %v1224_v26 = vmul.f32 %v1208_v23, %v1145_v21 }
 0x1a7   : > { %v1082_v27 = vpop.f32.mrf.mxu0  ;;  %v766_v28 = vmul.f32 %v750_v25, %v638_v9 }
 0x1a8   : > { %v1147_v30 = vpop.f32.mrf.mxu1  ;;  %v1083_v51 = vadd.f32 %v2878_v45, %v1082_v27  ;;  %v1240_v52 = vmul.f32 %v1224_v26, %v1145_v21 }
 0x1a9   : > { %890 = vmatmul.f32.gmra.mxu2 %v766_v28  ;;  %955 = vmatmul.f32.gmra.mxu3 %v766_v28 }
 0x1aa   : > { %v1148_v11 = vadd.f32 %v1147_v30, %v1083_v51  ;;  %v1256_v12 = vadd.f32 %v1240_v52, %v1145_v21 }
 0x1ac   : > { %v2022_v32 = vpop.eup %2021  ;;  %v1272_v38 = vmul.f32 0.7978846, %v1256_v12  ;;  %v1209_v63 = vmul.f32 0.044715, %v1148_v11  ;;  %v1193_v62 = vmul.f32 0.5, %v1148_v11 }
 0x1ad   : > { %v751_v34 = vadd.f32 1.0, %v2022_v32 }
 0x1ae   : > { %2023 = vtanh.f32 %v1272_v38  ;;  %v1225_v0 = vmul.f32 %v1209_v63, %v1148_v11 }
 0x1af   : > { %v1085_v37 = vpop.f32.mrf.mxu0  ;;  %v767_v39 = vmul.f32 %v751_v34, %v639_v33 }
 0x1b0   : > { %v1150_v40 = vpop.f32.mrf.mxu1  ;;  %v1086_v31 = vadd.f32 %v2878_v45, %v1085_v37  ;;  %v1241_v41 = vmul.f32 %v1225_v0, %v1148_v11 }
 0x1b1   : > { %893 = vmatmul.f32.gmra.mxu2 %v767_v39  ;;  %958 = vmatmul.f32.gmra.mxu3 %v767_v39 }
 0x1b2   : > { %v1151_v42 = vadd.f32 %v1150_v40, %v1086_v31  ;;  %v1257_v43 = vadd.f32 %v1241_v41, %v1148_v11 }
 0x1b4   : > { %v2024_v44 = vpop.eup %2023  ;;  %v1273_v49 = vmul.f32 0.7978846, %v1257_v43  ;;  %v1210_v15 = vmul.f32 0.044715, %v1151_v42  ;;  %v1194_v17 = vmul.f32 0.5, %v1151_v42 }
 0x1b5   : > { %v1304_v35 = vadd.f32 1.0, %v2024_v44 }
 0x1b6   : > { %2025 = vtanh.f32 %v1273_v49  ;;  %v1226_v47 = vmul.f32 %v1210_v15, %v1151_v42 }
 0x1b7   : > { %v1088_v48 = vpop.f32.mrf.mxu0  ;;  %v1320_v55 = vmul.f32 %v1304_v35, %v1192_v16 }
 0x1b8   : > { %v1153_v53 = vpop.f32.mrf.mxu1  ;;  %v1089_v56 = vadd.f32 %v2878_v45, %v1088_v48  ;;  %v1242_v3 = vmul.f32 %v1226_v47, %v1151_v42 }
 0x1b9   : > { %1416 = vmatmul.f32.vlgmr.msrb.gmra.mxu2 %v1320_v55  ;;  %1481 = vmatmul.f32.vlgmr.msrb.gmra.mxu3 %v1320_v55 }
 0x1ba   : > { %v1154_v4 = vadd.f32 %v1153_v53, %v1089_v56  ;;  %v1258_v54 = vadd.f32 %v1242_v3, %v1151_v42 }
 0x1bc   : > { %v2026_v57 = vpop.eup %2025  ;;  %v2884_v50 = vpop.f32.mrf.mxu2  ;;  %v1274_v58 = vmul.f32 0.7978846, %v1258_v54  ;;  %v1211_v61 = vmul.f32 0.044715, %v1154_v4  ;;  %v1195_v11 = vmul.f32 0.5, %v1154_v4 }
 0x1bd   : > { %v2886_v36 = vpop.f32.mrf.mxu3  ;;  %v1305_v19 = vadd.f32 1.0, %v2026_v57 }
 0x1be   : > { %2027 = vtanh.f32 %v1274_v58  ;;  %v1227_v1 = vmul.f32 %v1211_v61, %v1154_v4 }
 0x1bf   : > { %v1091_v20 = vpop.f32.mrf.mxu0  ;;  %v1321_v5 = vmul.f32 %v1305_v19, %v1193_v62 }
 0x1c0   : > { %v1156_v2 = vpop.f32.mrf.mxu1  ;;  %v1092_v6 = vadd.f32 %v2878_v45, %v1091_v20  ;;  %v1243_v46 = vmul.f32 %v1227_v1, %v1154_v4 }
 0x1c1   : > { %1419 = vmatmul.f32.gmra.mxu2 %v1321_v5  ;;  %1484 = vmatmul.f32.gmra.mxu3 %v1321_v5 }
 0x1c2   : > { %v1157_v10 = vadd.f32 %v1156_v2, %v1092_v6  ;;  %v1259_v13 = vadd.f32 %v1243_v46, %v1154_v4 }
 0x1c4   : > { %v2028_v7 = vpop.eup %2027  ;;  %v2889_v8 = vpop.f32.mrf.mxu2  ;;  %v1275_v29 = vmul.f32 0.7978846, %v1259_v13  ;;  %v1212_v60 = vmul.f32 0.044715, %v1157_v10  ;;  %v1196_v44 = vmul.f32 0.5, %v1157_v10 }
 0x1c5   : > { %v2891_v59 = vpop.f32.mrf.mxu3  ;;  %v1306_v14 = vadd.f32 1.0, %v2028_v7 }
 0x1c6   : > { %2029 = vtanh.f32 %v1275_v29  ;;  %v1228_v21 = vmul.f32 %v1212_v60, %v1157_v10 }
 0x1c7   : > { %v1094_v22 = vpop.f32.mrf.mxu0  ;;  %v1322_v23 = vmul.f32 %v1306_v14, %v1194_v17 }
 0x1c8   : > { %v1159_v18 = vpop.f32.mrf.mxu1  ;;  %v1095_v24 = vadd.f32 %v2878_v45, %v1094_v22  ;;  %v1244_v9 = vmul.f32 %v1228_v21, %v1157_v10 }
 0x1c9   : > { %1422 = vmatmul.f32.gmra.mxu2 %v1322_v23  ;;  %1487 = vmatmul.f32.gmra.mxu3 %v1322_v23 }
 0x1ca   : > { %v1160_v25 = vadd.f32 %v1159_v18, %v1095_v24  ;;  %v1260_v26 = vadd.f32 %v1244_v9, %v1157_v10 }
 0x1cc   : > { %v2030_v27 = vpop.eup %2029  ;;  %v2894_v28 = vpop.f32.mrf.mxu2  ;;  %v1276_v51 = vmul.f32 0.7978846, %v1260_v26  ;;  %v1213_v52 = vmul.f32 0.044715, %v1160_v25  ;;  %v1197_v61 = vmul.f32 0.5, %v1160_v25 }
 0x1cd   : > { %v2896_v30 = vpop.f32.mrf.mxu3  ;;  %v1307_v12 = vadd.f32 1.0, %v2030_v27 }
 0x1ce   : > { %2031 = vtanh.f32 %v1276_v51  ;;  %v1229_v32 = vmul.f32 %v1213_v52, %v1160_v25 }
 0x1cf   : > { %v1097_v38 = vpop.f32.mrf.mxu0  ;;  %v1323_v33 = vmul.f32 %v1307_v12, %v1195_v11 }
 0x1d0   : > { %v1162_v63 = vpop.f32.mrf.mxu1  ;;  %v1098_v34 = vadd.f32 %v2878_v45, %v1097_v38  ;;  %v1245_v0 = vmul.f32 %v1229_v32, %v1160_v25 }
 0x1d1   : > { %1425 = vmatmul.f32.gmra.mxu2 %v1323_v33  ;;  %1490 = vmatmul.f32.gmra.mxu3 %v1323_v33 }
 0x1d2   : > { %v1163_v37 = vadd.f32 %v1162_v63, %v1098_v34  ;;  %v1261_v39 = vadd.f32 %v1245_v0, %v1160_v25 }
 0x1d4   : > { %v2032_v40 = vpop.eup %2031  ;;  %v2899_v31 = vpop.f32.mrf.mxu2  ;;  %v1277_v42 = vmul.f32 0.7978846, %v1261_v39  ;;  %v1214_v43 = vmul.f32 0.044715, %v1163_v37  ;;  %v1198_v14 = vmul.f32 0.5, %v1163_v37 }
 0x1d5   : > { %v2901_v41 = vpop.f32.mrf.mxu3  ;;  %v1308_v49 = vadd.f32 1.0, %v2032_v40 }
 0x1d6   : > { %2033 = vtanh.f32 %v1277_v42  ;;  %v1230_v15 = vmul.f32 %v1214_v43, %v1163_v37 }
 0x1d7   : > { %v1100_v16 = vpop.f32.mrf.mxu0  ;;  %v1324_v47 = vmul.f32 %v1308_v49, %v1196_v44 }
 0x1d8   : > { %v1165_v35 = vpop.f32.mrf.mxu1  ;;  %v1101_v48 = vadd.f32 %v2878_v45, %v1100_v16  ;;  %v1246_v53 = vmul.f32 %v1230_v15, %v1163_v37 }
 0x1d9   : > { %1428 = vmatmul.f32.gmra.mxu2 %v1324_v47  ;;  %1493 = vmatmul.f32.gmra.mxu3 %v1324_v47 }
 0x1da   : > { %v1166_v55 = vadd.f32 %v1165_v35, %v1101_v48  ;;  %v1262_v56 = vadd.f32 %v1246_v53, %v1163_v37 }
 0x1dc   : > { %v2034_v3 = vpop.eup %2033  ;;  %v2904_v4 = vpop.f32.mrf.mxu2  ;;  %v1278_v57 = vmul.f32 0.7978846, %v1262_v56  ;;  %v1215_v58 = vmul.f32 0.044715, %v1166_v55  ;;  %v1199_v38 = vmul.f32 0.5, %v1166_v55 }
 0x1dd   : > { %v2906_v54 = vpop.f32.mrf.mxu3  ;;  %v1309_v62 = vadd.f32 1.0, %v2034_v3 }
 0x1de   : > { %2035 = vtanh.f32 %v1278_v57  ;;  %v1231_v19 = vmul.f32 %v1215_v58, %v1166_v55 }
 0x1df   : > { %v1103_v1 = vpop.f32.mrf.mxu0  ;;  %v1325_v2 = vmul.f32 %v1309_v62, %v1197_v61 }
 0x1e0   : > { %v1168_v20 = vpop.f32.mrf.mxu1  ;;  %v1104_v5 = vadd.f32 %v2878_v45, %v1103_v1  ;;  %v1247_v6 = vmul.f32 %v1231_v19, %v1166_v55 }
 0x1e1   : > { %1431 = vmatmul.f32.gmra.mxu2 %v1325_v2  ;;  %1496 = vmatmul.f32.gmra.mxu3 %v1325_v2 }
 0x1e2   : > { %v1169_v46 = vadd.f32 %v1168_v20, %v1104_v5  ;;  %v1263_v10 = vadd.f32 %v1247_v6, %v1166_v55 }
 0x1e4   : > { %v2036_v13 = vpop.eup %2035  ;;  %v1216_v7 = vmul.f32 0.044715, %v1169_v46  ;;  %v2909_v29 = vpop.f32.mrf.mxu2  ;;  %v1279_v17 = vmul.f32 0.7978846, %v1263_v10  ;;  %v1200_v47 = vmul.f32 0.5, %v1169_v46 }
 0x1e5   : > { %v2911_v60 = vpop.f32.mrf.mxu3  ;;  %v1310_v21 = vadd.f32 1.0, %v2036_v13 }
 0x1e6   : > { %2037 = vtanh.f32 %v1279_v17  ;;  %v1232_v22 = vmul.f32 %v1216_v7, %v1169_v46 }
 0x1e7   : > { %v1106_v18 = vpop.f32.mrf.mxu0  ;;  %v1326_v24 = vmul.f32 %v1310_v21, %v1198_v14 }
 0x1e8   : > { %v1171_v23 = vpop.f32.mrf.mxu1  ;;  %v1107_v9 = vadd.f32 %v2878_v45, %v1106_v18  ;;  %v1248_v25 = vmul.f32 %v1232_v22, %v1169_v46 }
 0x1e9   : > { %1434 = vmatmul.f32.gmra.mxu2 %v1326_v24  ;;  %1499 = vmatmul.f32.gmra.mxu3 %v1326_v24 }
 0x1ea   : > { %v1172_v26 = vadd.f32 %v1171_v23, %v1107_v9  ;;  %v1264_v27 = vadd.f32 %v1248_v25, %v1169_v46 }
 0x1ec   : > { %v2038_v51 = vpop.eup %2037  ;;  %v1217_v52 = vmul.f32 0.044715, %v1172_v26  ;;  %v2914_v11 = vpop.f32.mrf.mxu2  ;;  %v1280_v32 = vmul.f32 0.7978846, %v1264_v27  ;;  %v1201_v6 = vmul.f32 0.5, %v1172_v26 }
 0x1ed   : > { %v2916_v12 = vpop.f32.mrf.mxu3  ;;  %v1311_v63 = vadd.f32 1.0, %v2038_v51 }
 0x1ee   : > { %2039 = vtanh.f32 %v1280_v32  ;;  %v1233_v33 = vmul.f32 %v1217_v52, %v1172_v26 }
 0x1ef   : > { %v1109_v34 = vpop.f32.mrf.mxu0  ;;  %v1327_v37 = vmul.f32 %v1311_v63, %v1199_v38 }
 0x1f0   : > { %v1174_v0 = vpop.f32.mrf.mxu1  ;;  %v1110_v39 = vadd.f32 %v2878_v45, %v1109_v34  ;;  %v1249_v40 = vmul.f32 %v1233_v33, %v1172_v26 }
 0x1f1   : > { %1437 = vmatmul.f32.gmra.mxu2 %v1327_v37  ;;  %1502 = vmatmul.f32.gmra.mxu3 %v1327_v37 }
 0x1f2   : > { %v1175_v42 = vadd.f32 %v1174_v0, %v1110_v39  ;;  %v1265_v43 = vadd.f32 %v1249_v40, %v1172_v26 }
 0x1f4   : > { %v2040_v44 = vpop.eup %2039  ;;  %v1218_v49 = vmul.f32 0.044715, %v1175_v42  ;;  %v2919_v15 = vpop.f32.mrf.mxu2  ;;  %v1281_v35 = vmul.f32 0.7978846, %v1265_v43  ;;  %v1202_v27 = vmul.f32 0.5, %v1175_v42 }
 0x1f5   : > { %v2921_v16 = vpop.f32.mrf.mxu3  ;;  %v1312_v48 = vadd.f32 1.0, %v2040_v44 }
 0x1f6   : > { %2041 = vtanh.f32 %v1281_v35  ;;  %v1234_v53 = vmul.f32 %v1218_v49, %v1175_v42 }
 0x1f7   : > { %v1112_v55 = vpop.f32.mrf.mxu0  ;;  %v1328_v3 = vmul.f32 %v1312_v48, %v1200_v47 }
 0x1f8   : > { %v1177_v56 = vpop.f32.mrf.mxu1  ;;  %v1113_v57 = vadd.f32 %v2878_v45, %v1112_v55  ;;  %v1250_v58 = vmul.f32 %v1234_v53, %v1175_v42 }
 0x1f9   : > { %1440 = vmatmul.f32.gmra.mxu2 %v1328_v3  ;;  %1505 = vmatmul.f32.gmra.mxu3 %v1328_v3 }
 0x1fa   : > { %v1178_v61 = vadd.f32 %v1177_v56, %v1113_v57  ;;  %v1266_v62 = vadd.f32 %v1250_v58, %v1175_v42 }
 0x1fc   : > { %v2042_v19 = vpop.eup %2041  ;;  %v1219_v1 = vmul.f32 0.044715, %v1178_v61  ;;  %v2924_v20 = vpop.f32.mrf.mxu2  ;;  %v1282_v5 = vmul.f32 0.7978846, %v1266_v62  ;;  %v1203_v49 = vmul.f32 0.5, %v1178_v61 }
 0x1fd   : > { %v2926_v2 = vpop.f32.mrf.mxu3  ;;  %v1313_v46 = vadd.f32 1.0, %v2042_v19 }
 0x1fe   : > { %2043 = vtanh.f32 %v1282_v5  ;;  %v1235_v10 = vmul.f32 %v1219_v1, %v1178_v61 }
 0x1ff   : > { %v1115_v13 = vpop.f32.mrf.mxu0  ;;  %v1329_v17 = vmul.f32 %v1313_v46, %v1201_v6 }
 0x200   : > { %v1180_v7 = vpop.f32.mrf.mxu1  ;;  %v1116_v14 = vadd.f32 %v2878_v45, %v1115_v13  ;;  %v1251_v21 = vmul.f32 %v1235_v10, %v1178_v61 }
 0x201   : > { %1443 = vmatmul.f32.gmra.mxu2 %v1329_v17  ;;  %1508 = vmatmul.f32.gmra.mxu3 %v1329_v17 }
 0x202   : > { %v1181_v22 = vadd.f32 %v1180_v7, %v1116_v14  ;;  %v1267_v18 = vadd.f32 %v1251_v21, %v1178_v61 }
 0x204   : > { %v2044_v23 = vpop.eup %2043  ;;  %v1220_v24 = vmul.f32 0.044715, %v1181_v22  ;;  %v2929_v9 = vpop.f32.mrf.mxu2  ;;  %v1283_v26 = vmul.f32 0.7978846, %v1267_v18  ;;  %v1204_v6 = vmul.f32 0.5, %v1181_v22 }
 0x205   : > { %v2931_v25 = vpop.f32.mrf.mxu3  ;;  %v1314_v51 = vadd.f32 1.0, %v2044_v23 }
 0x206   : > { %2045 = vtanh.f32 %v1283_v26  ;;  %v1236_v52 = vmul.f32 %v1220_v24, %v1181_v22 }
 0x207   : > { %v1118_v32 = vpop.f32.mrf.mxu0  ;;  %v1330_v63 = vmul.f32 %v1314_v51, %v1202_v27 }
 0x208   : > { %v1183_v38 = vpop.f32.mrf.mxu1  ;;  %v1119_v33 = vadd.f32 %v2878_v45, %v1118_v32  ;;  %v1252_v34 = vmul.f32 %v1236_v52, %v1181_v22 }
 0x209   : > { %1446 = vmatmul.f32.gmra.mxu2 %v1330_v63  ;;  %1511 = vmatmul.f32.gmra.mxu3 %v1330_v63 }
 0x20a   : > { %v1184_v0 = vadd.f32 %v1183_v38, %v1119_v33  ;;  %v1268_v37 = vadd.f32 %v1252_v34, %v1181_v22 }
 0x20c   : > { %v2046_v39 = vpop.eup %2045  ;;  %v1221_v40 = vmul.f32 0.044715, %v1184_v0  ;;  %v2934_v43 = vpop.f32.mrf.mxu2  ;;  %v1284_v42 = vmul.f32 0.7978846, %v1268_v37  ;;  %v1205_v52 = vmul.f32 0.5, %v1184_v0 }
 0x20d   : > { %v2936_v44 = vpop.f32.mrf.mxu3  ;;  %v1315_v35 = vadd.f32 1.0, %v2046_v39 }
 0x20e   : > { %2047 = vtanh.f32 %v1284_v42  ;;  %v1237_v47 = vmul.f32 %v1221_v40, %v1184_v0 }
 0x20f   : > { %v1121_v48 = vpop.f32.mrf.mxu0  ;;  %v1331_v55 = vmul.f32 %v1315_v35, %v1203_v49 }
 0x210   : > { %v1186_v53 = vpop.f32.mrf.mxu1  ;;  %v1122_v56 = vadd.f32 %v2878_v45, %v1121_v48  ;;  %v1253_v3 = vmul.f32 %v1237_v47, %v1184_v0 }
 0x211   : > { %1449 = vmatmul.f32.gmra.mxu2 %v1331_v55  ;;  %1514 = vmatmul.f32.gmra.mxu3 %v1331_v55 }
 0x212   : > { %v1187_v57 = vadd.f32 %v1186_v53, %v1122_v56  ;;  %v1269_v58 = vadd.f32 %v1253_v3, %v1184_v0 }
 0x214   : > { %v2048_v62 = vpop.eup %2047  ;;  %v1222_v19 = vmul.f32 0.044715, %v1187_v57  ;;  %v2939_v1 = vpop.f32.mrf.mxu2  ;;  %v1285_v61 = vmul.f32 0.7978846, %v1269_v58  ;;  %v1206_v42 = vmul.f32 0.5, %v1187_v57 }
 0x215   : > { %v2941_v5 = vpop.f32.mrf.mxu3  ;;  %v1316_v46 = vadd.f32 1.0, %v2048_v62  ;;  %v769_v62 = vld [vmem:[#allocation2] sm:$0xff] }
 0x216   : > { %2049 = vtanh.f32 %v1285_v61  ;;  %v1238_v10 = vmul.f32 %v1222_v19, %v1187_v57  ;;  %v963_v61 = vadd.f32 %v2886_v36, %v769_v62 }
 0x217   : > { %v1124_v13 = vpop.f32.mrf.mxu0  ;;  %v1332_v17 = vmul.f32 %v1316_v46, %v1204_v6 }
 0x218   : > { %v1189_v7 = vpop.f32.mrf.mxu1  ;;  %v1125_v14 = vadd.f32 %v2878_v45, %v1124_v13  ;;  %v1254_v21 = vmul.f32 %v1238_v10, %v1187_v57 }
 0x219   : > { %1452 = vmatmul.f32.gmra.mxu2 %v1332_v17  ;;  %1517 = vmatmul.f32.gmra.mxu3 %v1332_v17  ;;  %v771_v17 = vld [vmem:[#allocation2 + $0x18] sm:$0xff] }
 0x21a   : > { %v1190_v18 = vadd.f32 %v1189_v7, %v1125_v14  ;;  %v1270_v23 = vadd.f32 %v1254_v21, %v1187_v57  ;;  %v768_v57 = vld [vmem:[#allocation2 + $0xb0] sm:$0xff]  ;;  %v770_v7 = vld [vmem:[#allocation2 + $0xd8] sm:$0xff]  ;;  %v965_v21 = vadd.f32 %v2891_v59, %v771_v17 }
 0x21b   : > { %v962_v19 = vadd.f32 %v2884_v50, %v768_v57  ;;  %v964_v14 = vadd.f32 %v2889_v8, %v770_v7  ;;  %v772_v50 = vld [vmem:[#allocation2 + $0x50] sm:$0xff] }
 0x21c   : > { %v2050_v24 = vpop.eup %2049  ;;  %v1223_v26 = vmul.f32 0.044715, %v1190_v18  ;;  %v2944_v27 = vpop.f32.mrf.mxu2  ;;  %v1286_v22 = vmul.f32 0.7978846, %v1270_v23  ;;  %v1207_v53 = vmul.f32 0.5, %v1190_v18  ;;  %v966_v36 = vadd.f32 %v2894_v28, %v772_v50  ;;  %v774_v8 = vld [vmem:[#allocation2 + $0x30] sm:$0xff] }
 0x21d   : > { %v2946_v51 = vpop.f32.mrf.mxu3  ;;  %v1317_v32 = vadd.f32 1.0, %v2050_v24  ;;  %v968_v59 = vadd.f32 %v2899_v31, %v774_v8  ;;  %v776_v28 = vld [vmem:[#allocation2 + $0x80] sm:$0xff]  ;;  %v778_v31 = vld [vmem:[#allocation2 + $0xe8] sm:$0xff]  ;;  %v781_v7 = vld [vmem:[#allocation2 + $0xf0] sm:$0xff] }
 0x21e   : > { %2051 = vtanh.f32 %v1286_v22  ;;  %v1239_v38 = vmul.f32 %v1223_v26, %v1190_v18  ;;  %v773_v22 = vld [vmem:[#allocation2 + $0x68] sm:$0xff]  ;;  %v975_v17 = vadd.f32 %v2916_v12, %v781_v7 }
 0x21f   : > { %v1333_v63 = vmul.f32 %v1317_v32, %v1205_v52  ;;  %v967_v52 = vadd.f32 %v2896_v30, %v773_v22  ;;  %v970_v30 = vadd.f32 %v2904_v4, %v776_v28  ;;  %v780_v4 = vld [vmem:[#allocation2 + $0x60] sm:$0xff]  ;;  %v789_v28 = vld [vmem:[#allocation2 + $0x90] sm:$0xff] }
 0x220   : > { %v1255_v33 = vmul.f32 %v1239_v38, %v1190_v18 }
 0x221   : > { %1455 = vmatmul.f32.gmra.mxu2 %v1333_v63  ;;  %1520 = vmatmul.f32.gmra.mxu3 %v1333_v63 }
 0x222   : > { %v1271_v45 = vadd.f32 %v1255_v33, %v1190_v18 }
 0x224   : > { %v2052_v34 = vpop.eup %2051  ;;  %v2948_v37 = vpop.f32.mrf.mxu2  ;;  %v1287_v40 = vmul.f32 0.7978846, %v1271_v45  ;;  %v775_v45 = vld [vmem:[#allocation2 + $0x48] sm:$0xff] }
 0x225   : > { %v2950_v39 = vpop.f32.mrf.mxu3  ;;  %v1318_v49 = vadd.f32 1.0, %v2052_v34  ;;  %v969_v34 = vadd.f32 %v2901_v41, %v775_v45  ;;  %v972_v41 = vadd.f32 %v2909_v29, %v778_v31  ;;  %v782_v29 = vld [vmem:[#allocation2 + $0x8] sm:$0xff] }
 0x226   : > { %2053 = vtanh.f32 %v1287_v40 }
 0x227   : > { %v1334_v35 = vmul.f32 %v1318_v49, %v1206_v42 }
 0x229   : > { %1458 = vmatmul.f32.gmra.mxu2 %v1334_v35  ;;  %1523 = vmatmul.f32.gmra.mxu3 %v1334_v35 }
 0x22c   : > { %v2054_v0 = vpop.eup %2053  ;;  %v2952_v47 = vpop.f32.mrf.mxu2 }
 0x22d   : > { %v2954_v48 = vpop.f32.mrf.mxu3  ;;  %v1319_v55 = vadd.f32 1.0, %v2054_v0  ;;  %v777_v0 = vld [vmem:[#allocation2 + $0x88] sm:$0xff] }
 0x22f   : > { %v1335_v56 = vmul.f32 %v1319_v55, %v1207_v53  ;;  %v971_v53 = vadd.f32 %v2906_v54, %v777_v0  ;;  %v974_v54 = vadd.f32 %v2914_v11, %v780_v4  ;;  %v784_v11 = vld [vmem:[#allocation2 + $0x38] sm:$0xff]  ;;  %v983_v0 = vadd.f32 %v2936_v44, %v789_v28 }
 0x230   : > { %v978_v12 = vadd.f32 %v2924_v20, %v784_v11  ;;  %v788_v20 = vld [vmem:[#allocation2 + $0xe0] sm:$0xff] }
 0x231   : > { %1461 = vmatmul.f32.gmra.mxu2 %v1335_v56  ;;  %1526 = vmatmul.f32.gmra.mxu3 %v1335_v56 }
 0x234   : > { %v2956_v3 = vpop.f32.mrf.mxu2 }
 0x235   : > { %v2958_v58 = vpop.f32.mrf.mxu3 }
 0x23c   : > { %v1417_v6 = vpop.f32.mrf.mxu2 }
 0x23d   : > { %v1482_v46 = vpop.f32.mrf.mxu3  ;;  %v1530_v10 = vadd.f32 %v1417_v6, %v962_v19  ;;  %v779_v19 = vld [vmem:[#allocation2 + $0xb8] sm:$0xff] }
 0x23e   : > { %v1531_v13 = vadd.f32 %v1482_v46, %v963_v61  ;;  %v973_v61 = vadd.f32 %v2911_v60, %v779_v19  ;;  %v976_v60 = vadd.f32 %v2919_v15, %v782_v29  ;;  %v786_v15 = vld [vmem:[#allocation2 + $0x40] sm:$0xff]  ;;  %v797_v29 = vld [vmem:[#allocation2 + $0xf8] sm:$0xff] }
 0x23f   : > { %1562 = vst [vmem:[#allocation2 + $0xb0] sm:$0xff] %v1530_v10 }
 0x240   : > { %1563 = vst [vmem:[#allocation2] sm:$0xff] %v1531_v13 }
 0x244   : > { %v1420_v18 = vpop.f32.mrf.mxu2 }
 0x245   : > { %v1485_v23 = vpop.f32.mrf.mxu3  ;;  %v1532_v24 = vadd.f32 %v1420_v18, %v964_v14 }
 0x246   : > { %v1533_v26 = vadd.f32 %v1485_v23, %v965_v21 }
 0x247   : > { %1564 = vst [vmem:[#allocation2 + $0xd8] sm:$0xff] %v1532_v24  ;;  %v783_v24 = vld [vmem:[#allocation2 + $0x78] sm:$0xff] }
 0x248   : > { %1565 = vst [vmem:[#allocation2 + $0x18] sm:$0xff] %v1533_v26  ;;  %v977_v26 = vadd.f32 %v2921_v16, %v783_v24  ;;  %v980_v16 = vadd.f32 %v2929_v9, %v786_v15  ;;  %v790_v9 = vld [vmem:[#allocation2 + $0x70] sm:$0xff]  ;;  %v991_v24 = vadd.f32 %v2954_v48, %v797_v29 }
 0x24c   : > { %v1423_v32 = vpop.f32.mrf.mxu2 }
 0x24d   : > { %v1488_v38 = vpop.f32.mrf.mxu3  ;;  %v1534_v63 = vadd.f32 %v1423_v32, %v966_v36  ;;  %v785_v32 = vld [vmem:[#allocation2 + $0x58] sm:$0xff] }
 0x24e   : > { %v1535_v33 = vadd.f32 %v1488_v38, %v967_v52  ;;  %v979_v38 = vadd.f32 %v2926_v2, %v785_v32  ;;  %v982_v2 = vadd.f32 %v2934_v43, %v788_v20  ;;  %v792_v43 = vld [vmem:[#allocation2 + $0xa8] sm:$0xff] }
 0x24f   : > { %1566 = vst [vmem:[#allocation2 + $0x50] sm:$0xff] %v1534_v63  ;;  %v986_v44 = vadd.f32 %v2944_v27, %v792_v43  ;;  %v796_v27 = vld [vmem:[#allocation2 + $0xa0] sm:$0xff] }
 0x250   : > { %1567 = vst [vmem:[#allocation2 + $0x68] sm:$0xff] %v1535_v33 }
 0x254   : > { %v1426_v40 = vpop.f32.mrf.mxu2 }
 0x255   : > { %v1491_v42 = vpop.f32.mrf.mxu3  ;;  %v1536_v49 = vadd.f32 %v1426_v40, %v968_v59  ;;  %v787_v59 = vld [vmem:[#allocation2 + $0xc8] sm:$0xff] }
 0x256   : > { %v1537_v35 = vadd.f32 %v1491_v42, %v969_v34  ;;  %v981_v34 = vadd.f32 %v2931_v25, %v787_v59  ;;  %v984_v25 = vadd.f32 %v2939_v1, %v790_v9  ;;  %v794_v1 = vld [vmem:[#allocation2 + $0x10] sm:$0xff] }
 0x257   : > { %1568 = vst [vmem:[#allocation2 + $0x30] sm:$0xff] %v1536_v49 }
 0x258   : > { %1569 = vst [vmem:[#allocation2 + $0x48] sm:$0xff] %v1537_v35 }
 0x25c   : > { %v1429_v55 = vpop.f32.mrf.mxu2 }
 0x25d   : > { %v1494_v56 = vpop.f32.mrf.mxu3  ;;  %v1538_v57 = vadd.f32 %v1429_v55, %v970_v30 }
 0x25e   : > { %v1539_v62 = vadd.f32 %v1494_v56, %v971_v53 }
 0x25f   : > { %1570 = vst [vmem:[#allocation2 + $0x80] sm:$0xff] %v1538_v57  ;;  %v791_v57 = vld [vmem:[#allocation2 + $0xc0] sm:$0xff] }
 0x260   : > { %1571 = vst [vmem:[#allocation2 + $0x88] sm:$0xff] %v1539_v62  ;;  %v985_v62 = vadd.f32 %v2941_v5, %v791_v57  ;;  %v988_v5 = vadd.f32 %v2948_v37, %v794_v1  ;;  %v798_v37 = vld [vmem:[#allocation2 + $0x20] sm:$0xff] }
 0x264   : > { %v1432_v6 = vpop.f32.mrf.mxu2 }
 0x265   : > { %v1497_v46 = vpop.f32.mrf.mxu3  ;;  %v1540_v10 = vadd.f32 %v1432_v6, %v972_v41  ;;  %v793_v6 = vld [vmem:[#allocation2 + $0xd0] sm:$0xff] }
 0x266   : > { %v1541_v13 = vadd.f32 %v1497_v46, %v973_v61  ;;  %v987_v46 = vadd.f32 %v2946_v51, %v793_v6  ;;  %v990_v51 = vadd.f32 %v2952_v47, %v796_v27 }
 0x267   : > { %1572 = vst [vmem:[#allocation2 + $0xe8] sm:$0xff] %v1540_v10 }
 0x268   : > { %1573 = vst [vmem:[#allocation2 + $0xb8] sm:$0xff] %v1541_v13 }
 0x26c   : > { %v1435_v14 = vpop.f32.mrf.mxu2 }
 0x26d   : > { %v1500_v21 = vpop.f32.mrf.mxu3  ;;  %v1542_v18 = vadd.f32 %v1435_v14, %v974_v54  ;;  %v795_v54 = vld [vmem:[#allocation2 + $0x28] sm:$0xff] }
 0x26e   : > { %v1543_v23 = vadd.f32 %v1500_v21, %v975_v17  ;;  %v989_v17 = vadd.f32 %v2950_v39, %v795_v54  ;;  %v992_v39 = vadd.f32 %v2956_v3, %v798_v37 }
 0x26f   : > { %1574 = vst [vmem:[#allocation2 + $0x60] sm:$0xff] %v1542_v18 }
 0x270   : > { %1575 = vst [vmem:[#allocation2 + $0xf0] sm:$0xff] %v1543_v23 }
 0x274   : > { %v1438_v50 = vpop.f32.mrf.mxu2 }
 0x275   : > { %v1503_v22 = vpop.f32.mrf.mxu3  ;;  %v1544_v36 = vadd.f32 %v1438_v50, %v976_v60 }
 0x276   : > { %v1545_v52 = vadd.f32 %v1503_v22, %v977_v26 }
 0x277   : > { %1576 = vst [vmem:[#allocation2 + $0x8] sm:$0xff] %v1544_v36  ;;  %v799_v36 = vld [vmem:[#allocation2 + $0x98] sm:$0xff] }
 0x278   : > { %1577 = vst [vmem:[#allocation2 + $0x78] sm:$0xff] %v1545_v52  ;;  %v993_v52 = vadd.f32 %v2958_v58, %v799_v36 }
 0x27c   : > { %v1441_v63 = vpop.f32.mrf.mxu2 }
 0x27d   : > { %v1506_v33 = vpop.f32.mrf.mxu3  ;;  %v1546_v8 = vadd.f32 %v1441_v63, %v978_v12 }
 0x27e   : > { %v1547_v45 = vadd.f32 %v1506_v33, %v979_v38 }
 0x27f   : > { %1578 = vst [vmem:[#allocation2 + $0x38] sm:$0xff] %v1546_v8 }
 0x280   : > { %1579 = vst [vmem:[#allocation2 + $0x58] sm:$0xff] %v1547_v45 }
 0x284   : > { %v1444_v40 = vpop.f32.mrf.mxu2 }
 0x285   : > { %v1509_v42 = vpop.f32.mrf.mxu3  ;;  %v1548_v49 = vadd.f32 %v1444_v40, %v980_v16 }
 0x286   : > { %v1549_v35 = vadd.f32 %v1509_v42, %v981_v34 }
 0x287   : > { %1580 = vst [vmem:[#allocation2 + $0x40] sm:$0xff] %v1548_v49 }
 0x288   : > { %1581 = vst [vmem:[#allocation2 + $0xc8] sm:$0xff] %v1549_v35 }
 0x28c   : > { %v1447_v30 = vpop.f32.mrf.mxu2 }
 0x28d   : > { %v1512_v53 = vpop.f32.mrf.mxu3  ;;  %v1550_v55 = vadd.f32 %v1447_v30, %v982_v2 }
 0x28e   : > { %v1551_v56 = vadd.f32 %v1512_v53, %v983_v0 }
 0x28f   : > { %1582 = vst [vmem:[#allocation2 + $0xe0] sm:$0xff] %v1550_v55 }
 0x290   : > { %1583 = vst [vmem:[#allocation2 + $0x90] sm:$0xff] %v1551_v56 }
 0x294   : > { %v1450_v31 = vpop.f32.mrf.mxu2 }
 0x295   : > { %v1515_v19 = vpop.f32.mrf.mxu3  ;;  %v1552_v41 = vadd.f32 %v1450_v31, %v984_v25 }
 0x296   : > { %v1553_v61 = vadd.f32 %v1515_v19, %v985_v62 }
 0x297   : > { %1584 = vst [vmem:[#allocation2 + $0x70] sm:$0xff] %v1552_v41 }
 0x298   : > { %1585 = vst [vmem:[#allocation2 + $0xc0] sm:$0xff] %v1553_v61 }
 0x29c   : > { %v1453_v10 = vpop.f32.mrf.mxu2 }
 0x29d   : > { %v1518_v13 = vpop.f32.mrf.mxu3  ;;  %v1554_v4 = vadd.f32 %v1453_v10, %v986_v44 }
 0x29e   : > { %v1555_v7 = vadd.f32 %v1518_v13, %v987_v46 }
 0x29f   : > { %1586 = vst [vmem:[#allocation2 + $0xa8] sm:$0xff] %v1554_v4 }
 0x2a0   : > { %1587 = vst [vmem:[#allocation2 + $0xd0] sm:$0xff] %v1555_v7 }
 0x2a4   : > { %v1456_v14 = vpop.f32.mrf.mxu2 }
 0x2a5   : > { %v1521_v21 = vpop.f32.mrf.mxu3  ;;  %v1556_v18 = vadd.f32 %v1456_v14, %v988_v5 }
 0x2a6   : > { %v1557_v23 = vadd.f32 %v1521_v21, %v989_v17 }
 0x2a7   : > { %1588 = vst [vmem:[#allocation2 + $0x10] sm:$0xff] %v1556_v18 }
 0x2a8   : > { %1589 = vst [vmem:[#allocation2 + $0x28] sm:$0xff] %v1557_v23 }
 0x2ac   : > { %v1459_v60 = vpop.f32.mrf.mxu2 }
 0x2ad   : > { %v1524_v26 = vpop.f32.mrf.mxu3  ;;  %v1558_v50 = vadd.f32 %v1459_v60, %v990_v51 }
 0x2ae   : > { %v1559_v22 = vadd.f32 %v1524_v26, %v991_v24 }
 0x2af   : > { %1590 = vst [vmem:[#allocation2 + $0xa0] sm:$0xff] %v1558_v50 }
 0x2b0   : > { %1591 = vst [vmem:[#allocation2 + $0xf8] sm:$0xff] %v1559_v22 }
 0x2b4   : > { %v1462_v11 = vpop.f32.mrf.mxu2  ;;  %1597 = sbr.rel (%p1853_p8) target bundleno = 730 (0x2da), region = 64 }
 0x2b5   : > { %v1527_v32 = vpop.f32.mrf.mxu3  ;;  %v1560_v12 = vadd.f32 %v1462_v11, %v992_v39 }
 0x2b6   : > { %v1561_v38 = vadd.f32 %v1527_v32, %v993_v52 }
 0x2b7   : > { %1592 = vst [vmem:[#allocation2 + $0x20] sm:$0xff] %v1560_v12 }
 0x2b8   : > { %1593 = vst [vmem:[#allocation2 + $0x98] sm:$0xff] %v1561_v38 }
 0x2b9   : > { %v1598_v47 = vld [vmem:[#allocation2 + $0xb0] sm:$0xff]  ;;  %v1599_v48 = vld [vmem:[#allocation2] sm:$0xff]  ;;  %v1600_v3 = vld [vmem:[#allocation2 + $0xd8] sm:$0xff] }
 0x2ba   : > { %1630 = vst [vmem:[%s2564_s30] sm:$0xff] %v1598_v47  ;;  %v1601_v58 = vld [vmem:[#allocation2 + $0x18] sm:$0xff]  ;;  %v1602_v63 = vld [vmem:[#allocation2 + $0x50] sm:$0xff]  ;;  %v1603_v33 = vld [vmem:[#allocation2 + $0x68] sm:$0xff] }
 0x2bb   : > { %1631 = vst [vmem:[%s2564_s30 + $0x8] sm:$0xff] %v1599_v48  ;;  %v1604_v8 = vld [vmem:[#allocation2 + $0x30] sm:$0xff]  ;;  %v1605_v45 = vld [vmem:[#allocation2 + $0x48] sm:$0xff]  ;;  %v1606_v15 = vld [vmem:[#allocation2 + $0x80] sm:$0xff] }
 0x2bc   : > { %1632 = vst [vmem:[%s2564_s30 + $0x10] sm:$0xff] %v1600_v3  ;;  %v1607_v59 = vld [vmem:[#allocation2 + $0x88] sm:$0xff]  ;;  %v1609_v34 = vld [vmem:[#allocation2 + $0xb8] sm:$0xff]  ;;  %v1610_v40 = vld [vmem:[#allocation2 + $0x60] sm:$0xff] }
 0x2bd   : > { %1633 = vst [vmem:[%s2564_s30 + $0x18] sm:$0xff] %v1601_v58  ;;  %v1608_v16 = vld [vmem:[#allocation2 + $0xe8] sm:$0xff]  ;;  %v1611_v42 = vld [vmem:[#allocation2 + $0xf0] sm:$0xff]  ;;  %v1613_v35 = vld [vmem:[#allocation2 + $0x78] sm:$0xff] }
 0x2be   : > { %1634 = vst [vmem:[%s2564_s30 + $0x20] sm:$0xff] %v1602_v63  ;;  %v1612_v49 = vld [vmem:[#allocation2 + $0x8] sm:$0xff]  ;;  %v1614_v20 = vld [vmem:[#allocation2 + $0x38] sm:$0xff]  ;;  %v1616_v2 = vld [vmem:[#allocation2 + $0x40] sm:$0xff] }
 0x2bf   : > { %1635 = vst [vmem:[%s2564_s30 + $0x28] sm:$0xff] %v1603_v33  ;;  %v1615_v28 = vld [vmem:[#allocation2 + $0x58] sm:$0xff]  ;;  %v1617_v0 = vld [vmem:[#allocation2 + $0xc8] sm:$0xff]  ;;  %v1618_v30 = vld [vmem:[#allocation2 + $0xe0] sm:$0xff] }
 0x2c0   : > { %1636 = vst [vmem:[%s2564_s30 + $0x30] sm:$0xff] %v1604_v8  ;;  %v1619_v53 = vld [vmem:[#allocation2 + $0x90] sm:$0xff]  ;;  %v1621_v56 = vld [vmem:[#allocation2 + $0xc0] sm:$0xff]  ;;  %v1622_v9 = vld [vmem:[#allocation2 + $0xa8] sm:$0xff] }
 0x2c1   : > { %1637 = vst [vmem:[%s2564_s30 + $0x38] sm:$0xff] %v1605_v45  ;;  %v1620_v55 = vld [vmem:[#allocation2 + $0x70] sm:$0xff]  ;;  %v1625_v62 = vld [vmem:[#allocation2 + $0x28] sm:$0xff]  ;;  %v1626_v31 = vld [vmem:[#allocation2 + $0xa0] sm:$0xff] }
 0x2c2   : > { %1638 = vst [vmem:[%s2564_s30 + $0x40] sm:$0xff] %v1606_v15  ;;  %v1623_v57 = vld [vmem:[#allocation2 + $0xd0] sm:$0xff]  ;;  %v1627_v19 = vld [vmem:[#allocation2 + $0xf8] sm:$0xff]  ;;  %v1628_v41 = vld [vmem:[#allocation2 + $0x20] sm:$0xff] }
 0x2c3   : > { %1639 = vst [vmem:[%s2564_s30 + $0x48] sm:$0xff] %v1607_v59  ;;  %v1624_v25 = vld [vmem:[#allocation2 + $0x10] sm:$0xff]  ;;  %v1629_v61 = vld [vmem:[#allocation2 + $0x98] sm:$0xff] }
 0x2c4   : > { %1640 = vst [vmem:[%s2564_s30 + $0x50] sm:$0xff] %v1608_v16 }
 0x2c5   : > { %1641 = vst [vmem:[%s2564_s30 + $0x58] sm:$0xff] %v1609_v34 }
 0x2c6   : > { %1642 = vst [vmem:[%s2564_s30 + $0x60] sm:$0xff] %v1610_v40 }
 0x2c7   : > { %1643 = vst [vmem:[%s2564_s30 + $0x68] sm:$0xff] %v1611_v42 }
 0x2c8   : > { %1644 = vst [vmem:[%s2564_s30 + $0x70] sm:$0xff] %v1612_v49 }
 0x2c9   : > { %1645 = vst [vmem:[%s2564_s30 + $0x78] sm:$0xff] %v1613_v35 }
 0x2ca   : > { %1646 = vst [vmem:[%s2564_s30 + $0x80] sm:$0xff] %v1614_v20 }
 0x2cb   : > { %1647 = vst [vmem:[%s2564_s30 + $0x88] sm:$0xff] %v1615_v28 }
 0x2cc   : > { %1648 = vst [vmem:[%s2564_s30 + $0x90] sm:$0xff] %v1616_v2 }
 0x2cd   : > { %1649 = vst [vmem:[%s2564_s30 + $0x98] sm:$0xff] %v1617_v0 }
 0x2ce   : > { %1650 = vst [vmem:[%s2564_s30 + $0xa0] sm:$0xff] %v1618_v30 }
 0x2cf   : > { %1651 = vst [vmem:[%s2564_s30 + $0xa8] sm:$0xff] %v1619_v53 }
 0x2d0   : > { %1652 = vst [vmem:[%s2564_s30 + $0xb0] sm:$0xff] %v1620_v55 }
 0x2d1   : > { %1653 = vst [vmem:[%s2564_s30 + $0xb8] sm:$0xff] %v1621_v56 }
 0x2d2   : > { %1654 = vst [vmem:[%s2564_s30 + $0xc0] sm:$0xff] %v1622_v9 }
 0x2d3   : > { %1655 = vst [vmem:[%s2564_s30 + $0xc8] sm:$0xff] %v1623_v57 }
 0x2d4   : > { %1656 = vst [vmem:[%s2564_s30 + $0xd0] sm:$0xff] %v1624_v25 }
 0x2d5   : > { %1657 = vst [vmem:[%s2564_s30 + $0xd8] sm:$0xff] %v1625_v62 }
 0x2d6   : > { %1658 = vst [vmem:[%s2564_s30 + $0xe0] sm:$0xff] %v1626_v31 }
 0x2d7   : > { %1659 = vst [vmem:[%s2564_s30 + $0xe8] sm:$0xff] %v1627_v19 }
 0x2d8   : > { %1660 = vst [vmem:[%s2564_s30 + $0xf0] sm:$0xff] %v1628_v41 }
 0x2d9   : > { %1661 = vst [vmem:[%s2564_s30 + $0xf8] sm:$0xff] %v1629_v61 }
 0x2da PF: > { %s3136_s1 = sld [smem:[#allocation20_spill]]  ;;  %s1676_s0 = sshll.u32 %s2564_s30, 4  ;;  %s1677_s0 = int_to_ptr.vmem [resolvable:$true] %s1676_s0 }
 0x2db   : > { %s3138_s13 = sld [smem:[#allocation32_spill]]  ;;  %s1663_s24 = scalar_lea.sflag [#allocation5], %s2538_s23 }
 0x2e0   : > { %s1866_s12 = sshll.u32 %s3136_s1, 8 }
 0x2e1   : > { %s1675_s29 = scalar_lea.hbm %s3138_s13, %s1866_s12  ;;  %s2195_s16 = scalar_lea.hbm %s3138_s13, 512 }
 0x2e2   : > { %s1678_s4 = sshll.u32 %s1675_s29, 4  ;;  %s1679_s4 = int_to_ptr.hbm [resolvable:$true] %s1678_s4 }
 0x2e3   : > { %s2189_s27 = sshra.s32 %s1679_s4, 4  ;;  %s2190_s27 = int_to_ptr.hbm [resolvable:$true] %s2189_s27 }
 0x2e4   : > { %s2191_s28 = scalar_lea.hbm %s2190_s27, 256  ;;  %p2196_p4 = scmp.lt.s32.totalorder %s2190_s27, %s3138_s13 }
 0x2e5   : > { %p2192_p11 = scmp.ne.s32.totalorder %s2190_s27, %s2191_s28  ;;  %p2197_p6 = scmp.lt.s32.totalorder %s2195_s16, %s2191_s28 }
 0x2e7   : > { %p2193_p12 = pnand %p2192_p11, %p2493_p1  ;;  %p2198_p0 = por %p2197_p6, %p2196_p4 }
 0x2e9   : > { %p2194_p13 = pneg %p2193_p12 }
 0x2eb   : > { %p2199_p7 = pnand %p2198_p0, %p2194_p13 }
 0x2ed   : > { %2202 = shalt.err (!%p2199_p7)
}
 0x2ee   : > { %s2310_s23 = smov 256   ;;  %s2311_s17 = smov 16  }
 0x2ef   : > { %1875 = dma.vmem_to_hbm [thread:$0]  (%p2493_p1), %s1677_s0, 4096, %s1679_s4, %s1663_s24, %s2310_s23, %s2310_s23, %s2311_s17  }
 0x2f0 PF: > { %s3139_s18 = sld [smem:[#allocation22_spill]] }
 0x2f1   : > { %s3140_s30 = sld [smem:[#allocation17_spill]] }
 0x2f6   : > { %p1895_p9 = scmp.ge.s32.totalorder %s3139_s18, 2 }
 0x2f7   : > { %s1693_s7 = sand.u32 1, %s3140_s30  }
 0x2f8   : > { %p1891_p3 = pnand %p1895_p9, %p2500_p2  ;;  %s1694_s9 = scalar_lea.sflag [#allocation5], %s1693_s7 }
 0x2fa   : > { %p1892_p10 = pneg %p1891_p3 }
 0x2fc   : > { %2260 = dma.done.wait (%p1892_p10), %s1694_s9, 4096  }
 0x2fd   : > { %2262 = vsyncadd (%p1892_p10), %s1694_s9, 4294963200  ;;  %s27_s28 = sadd.s32 1, %s3139_s18   ;;  %s3142_s25 = sld [smem:[#allocation16_spill]] }
 0x2fe   : > { %p24_p5 = scmp.ge.s32.totalorder %s27_s28, 10   ;;  %s3143_s20 = sld [smem:[#allocation25_spill]] }
 0x2ff   : > { %s3144_s5 = sld [smem:[#allocation18_spill]]  ;;  %s3149_s18 = smov %s2269_s19 }
 0x300   : > { %s3145_s23 = sld [smem:[#allocation26_spill]]  ;;  %s3151_s21 = smov %s2281_s22 }
 0x301   : > { %s3146_s1 = sld [smem:[#allocation21_spill]]  ;;  %s3153_s24 = smov %s2297_s26 }
 0x302   : > { %s3147_s11 = sld [smem:[#allocation23_spill]] }
 0x303   : > { %s3148_s27 = sld [smem:[#allocation24_spill]]  ;;  %s3150_s19 = smov %s3142_s25 }
 0x304   :  { %26 = sbr.rel (!%p24_p5) target bundleno = 18 (0x12), region = 130 }
 0x305   : > { %s3152_s22 = smov %s3144_s5 }
 0x307   : > { %s3154_s25 = smov %s3146_s1 }
 0x308   : > { %s3155_s26 = smov %s3147_s11 }
 0x309   :  { %1700 = vsyncpa [#allocation4], 1 }
 0x30a   :  { %1702 = vsyncpa [#allocation4 + $0x1], 1 }
 0x30b   :  { %1703 = vsyncpa [#allocation7], 1 }
 0x30c   :  { %1705 = vsyncpa [#allocation7 + $0x1], 1 }
 0x30d   :  { %1706 = vsyncpa [#allocation10], 1 }
 0x30e   :  { %1708 = vsyncpa [#allocation10 + $0x1], 1 }
 0x30f   :  { %1709 = vsyncpa [#allocation5], 1 }
 0x310   :  { %1711 = vsyncpa [#allocation5 + $0x1], 1 }

</bundles_post_ra>
